<compile_context>
chip_gen: v5e
topology: v5e:2x2
jax: 0.10.0
libtpu: 0.0.40
codegen_flags: <defaults>
</compile_context>

<pallas_src>
import jax
import jax.numpy as jnp
import numpy as np
from jax.experimental import pallas as pl
from jax.experimental.pallas import tpu as pltpu


# ----------------------------------------------------------------------------
# Kernel
# ----------------------------------------------------------------------------
def _make_tft_kernel(wspec, bspec, H, n_layers):
    """wspec: name -> (row_off, out_rows, in_cols); bspec: name -> (row_off, rows)."""

    def kernel(xs_ref, xq_ref, w_ref, b_ref, out_ref, sw_ref, qw_ref):
        def W(name):
            off, o, k = wspec[name]
            return w_ref[off:off + o, :k]            # static sublane/lane slice

        def Bc(name):
            off, r = bspec[name]
            return b_ref[off:off + r, :]             # (r, 1) bias column

        def dot(a, b):
            return jnp.dot(a, b, preferred_element_type=jnp.float32)

        def affine(name, x):                          # W @ X + b  (column layout)
            return dot(W(name), x) + Bc(name)

        def sigmoid(x):
            # exact: sigmoid(x) == 0.5 * tanh(x / 2) + 0.5  -> one EUP push
            return 0.5 * jnp.tanh(0.5 * x) + 0.5

        def softmax_features(x):                      # softmax over feature rows
            m = jnp.max(x, axis=0, keepdims=True)
            e = jnp.exp(x - m)
            return e / jnp.sum(e, axis=0, keepdims=True)

        def grn(p, x):
            # fc1 || fc3 fused into a single (2H, in) matmul; sublane-split result.
            h2 = jnp.maximum(affine(p + "13", x), 0.0)            # (2H, TB)
            x1 = affine(p + "2", h2[:H, :])
            x2 = affine(p + "4", h2[H:, :])
            return x1 * sigmoid(x2)

        xs = xs_ref[...]                                          # (S_IN, TB)
        xq = xq_ref[...]                                          # (Q_IN, TB)

        # ---- variable selection networks ----
        s_w = softmax_features(grn("s_fc", xs))                   # (S_IN, TB)
        q_w = softmax_features(grn("q_fc", xq))                   # (Q_IN, TB)
        sw_ref[...] = s_w
        qw_ref[...] = q_w

        static_out = affine("static_fc", xs * s_w)                # (H, TB)

        # ---- LSTM over a length-1 sequence with zero initial state ----
        # h_prev = c_prev = 0 for every layer, so the recurrent matmul and the
        # forget-gate path vanish (f-gate rows dropped host-side).
        h = xq * q_w                                              # (Q_IN, TB)
        for layer in range(n_layers):
            g = affine(f"lstm{layer}", h)                         # (3H, TB): [i; g; o]
            i_g = sigmoid(g[0:H, :])
            g_g = jnp.tanh(g[H:2 * H, :])
            o_g = sigmoid(g[2 * H:3 * H, :])
            h = o_g * jnp.tanh(i_g * g_g)                         # c = i * g

        # ---- seq_len == 1 multi-head attention == out_proj(V_proj(x)) ----
        attn = affine("attn", h)                                  # (H, TB)

        # ---- final projection (fc weight split host-side; no concat) ----
        logits = dot(W("fc_s"), static_out) + dot(W("fc_a"), attn) + Bc("fc")
        out_ref[...] = sigmoid(logits)                            # (OUT, TB)

    return kernel


# ----------------------------------------------------------------------------
# Host-side weight folding (PyTorch-layout params -> kernel weight/bias dicts)
# ----------------------------------------------------------------------------
def fold_params(p, H, n_layers):
    (sw1, sb1, sw2, sb2, sw3, sb3, sw4, sb4,
     qw1, qb1, qw2, qb2, qw3, qb3, qw4, qb4,
     sfw, sfb) = p[:18]
    lstm = p[18:18 + 4 * n_layers]
    in_w, in_b, ow, ob, fcw, fcb = p[18 + 4 * n_layers:]

    weights, biases = {}, {}

    # GRNs: fuse fc1 || fc3 row-wise (PyTorch weights are already (out, in))
    weights["s_fc13"] = jnp.concatenate([sw1, sw3], axis=0)
    biases["s_fc13"] = jnp.concatenate([sb1, sb3], axis=0)
    weights["s_fc2"], biases["s_fc2"] = sw2, sb2
    weights["s_fc4"], biases["s_fc4"] = sw4, sb4
    weights["q_fc13"] = jnp.concatenate([qw1, qw3], axis=0)
    biases["q_fc13"] = jnp.concatenate([qb1, qb3], axis=0)
    weights["q_fc2"], biases["q_fc2"] = qw2, qb2
    weights["q_fc4"], biases["q_fc4"] = qw4, qb4

    weights["static_fc"], biases["static_fc"] = sfw, sfb

    # LSTM: drop W_hh (zero init state, seq_len == 1), fold b_ih + b_hh, and
    # drop the dead forget-gate rows -> keep [i; g; o] (3H rows).
    for layer in range(n_layers):
        w_ih, _w_hh, b_ih, b_hh = lstm[4 * layer:4 * layer + 4]
        b = b_ih + b_hh
        weights[f"lstm{layer}"] = jnp.concatenate([w_ih[0:H], w_ih[2 * H:]], axis=0)
        biases[f"lstm{layer}"] = jnp.concatenate([b[0:H], b[2 * H:]], axis=0)

    # Attention (seq_len == 1): fold V-proj and out_proj into one matmul.
    wv, bv = in_w[2 * H:3 * H], in_b[2 * H:3 * H]
    weights["attn"] = ow @ wv
    biases["attn"] = ow @ bv + ob

    # Final fc split into static / attention halves (avoids in-kernel concat).
    weights["fc_s"] = fcw[:, :H]
    weights["fc_a"] = fcw[:, H:]
    biases["fc"] = fcb
    return weights, biases


def _pack_slabs(weights, biases, width=128):
    """Pack every weight into one (rows, 128) slab and every bias into one
    (rows, 1) column slab; row offsets are 8-aligned so in-kernel slices are
    aligned sublane slices."""
    def rup8(n):
        return -(-n // 8) * 8

    wspec, woff = {}, 0
    for name, w in weights.items():
        o, k = int(w.shape[0]), int(w.shape[1])
        assert k <= width
        wspec[name] = (woff, o, k)
        woff += rup8(o)
    wslab = jnp.zeros((woff, width), jnp.float32)
    for name, w in weights.items():
        off, o, k = wspec[name]
        wslab = wslab.at[off:off + o, :k].set(w.astype(jnp.float32))

    bspec, boff = {}, 0
    for name, b in biases.items():
        r = int(b.shape[0])
        bspec[name] = (boff, r)
        boff += rup8(r)
    bslab = jnp.zeros((boff, 1), jnp.float32)
    for name, b in biases.items():
        off, r = bspec[name]
        bslab = bslab.at[off:off + r, 0].set(b.astype(jnp.float32))

    return wslab, wspec, bslab, bspec


# ----------------------------------------------------------------------------
# Wrapper
# ----------------------------------------------------------------------------
def _plan_batch(B, tile_cap=2048):
    """Batch lives on the lane axis -> tiles are multiples of 128, batch padded
    to a tile multiple, and >= 2 grid steps so the parallel axis can shard
    across both TensorCores on v7x."""
    lanes = 128
    n = max(2, -(-B // lanes))                      # 128-lane chunks, >= 2
    cpt = min(tile_cap // lanes, max(1, n // 2))    # chunks per tile
    n = -(-n // cpt) * cpt                          # pad chunk count to tile multiple
    return cpt * lanes, n * lanes, n // cpt         # TB, B_pad, grid steps


def tft_forward(x_static, x_sequence, params, *, hidden_size, lstm_layers,
                output_size):
    B, S_IN = x_static.shape
    _, Q_IN = x_sequence.shape
    H, OUT = hidden_size, output_size

    weights, biases = fold_params(params, H, lstm_layers)
    wslab, wspec, bslab, bspec = _pack_slabs(weights, biases)

    TB, B_pad, n_tiles = _plan_batch(B)

    # Transpose so batch is the lane (last) axis; zero-pad batch to B_pad.
    xs_t = jnp.pad(x_static.astype(jnp.float32).T, ((0, 0), (0, B_pad - B)))
    xq_t = jnp.pad(x_sequence.astype(jnp.float32).T, ((0, 0), (0, B_pad - B)))

    batch_map = lambda i: (0, i)
    const_map = lambda i: (0, 0)

    in_specs = [
        pl.BlockSpec((S_IN, TB), batch_map),
        pl.BlockSpec((Q_IN, TB), batch_map),
        pl.BlockSpec(wslab.shape, const_map),       # resident weight slab (1 DMA)
        pl.BlockSpec(bslab.shape, const_map),       # resident bias slab   (1 DMA)
    ]
    out_shape = (
        jax.ShapeDtypeStruct((OUT, B_pad), jnp.float32),
        jax.ShapeDtypeStruct((S_IN, B_pad), jnp.float32),
        jax.ShapeDtypeStruct((Q_IN, B_pad), jnp.float32),
    )
    out_specs = (
        pl.BlockSpec((OUT, TB), batch_map),
        pl.BlockSpec((S_IN, TB), batch_map),
        pl.BlockSpec((Q_IN, TB), batch_map),
    )

    kernel = _make_tft_kernel(wspec, bspec, H, lstm_layers)

    out_t, sw_t, qw_t = pl.pallas_call(
        kernel,
        out_shape=out_shape,
        grid=(n_tiles,),
        in_specs=in_specs,
        out_specs=out_specs,
        compiler_params=pltpu.CompilerParams(
            dimension_semantics=("parallel",)),
    )(xs_t, xq_t, wslab, bslab)

    # Back to (batch, features); drop batch padding.
    return out_t[:, :B].T, sw_t[:, :B].T, qw_t[:, :B].T


# ----------------------------------------------------------------------------
# Deterministic parameter construction (PyTorch nn.Linear / nn.LSTM / MHA layout)
# ----------------------------------------------------------------------------
def make_params(key, H, n_layers, out_size, s_in, q_in):
    state = [key]

    def nxt():
        state[0], sub = jax.random.split(state[0])
        return sub

    def W(o, i):           # nn.Linear weight layout: (out, in)
        return jax.random.normal(nxt(), (o, i), jnp.float32) * 0.1

    def Bv(o):             # bias: (out,)
        return jax.random.normal(nxt(), (o,), jnp.float32) * 0.1

    p = []
    # static GRN: fc1, fc2, fc3, fc4
    p += [W(H, s_in), Bv(H), W(s_in, H), Bv(s_in), W(H, s_in), Bv(H), W(s_in, H), Bv(s_in)]
    # sequence GRN
    p += [W(H, q_in), Bv(H), W(q_in, H), Bv(q_in), W(H, q_in), Bv(H), W(q_in, H), Bv(q_in)]
    # static_fc
    p += [W(H, s_in), Bv(H)]
    # LSTM layers: W_ih (4H, in), W_hh (4H, H), b_ih, b_hh (gate order i, f, g, o)
    for layer in range(n_layers):
        in_dim = q_in if layer == 0 else H
        p += [W(4 * H, in_dim), W(4 * H, H), Bv(4 * H), Bv(4 * H)]
    # MultiheadAttention: in_proj (3H, H) = [q; k; v], out_proj (H, H)
    p += [W(3 * H, H), Bv(3 * H), W(H, H), Bv(H)]
    # final fc: (out, 2H)
    p += [W(out_size, 2 * H), Bv(out_size)]
    return p


# ----------------------------------------------------------------------------
# Pure-JAX reference (PyTorch semantics, eval mode) for validation
# ----------------------------------------------------------------------------
def tft_reference(x_static, x_seq, p, *, hidden_size, lstm_layers):
    H = hidden_size
    (sw1, sb1, sw2, sb2, sw3, sb3, sw4, sb4,
     qw1, qb1, qw2, qb2, qw3, qb3, qw4, qb4,
     sfw, sfb) = p[:18]
    lstm = p[18:18 + 4 * lstm_layers]
    in_w, in_b, ow, ob, fcw, fcb = p[18 + 4 * lstm_layers:]

    def lin(x, w, b):
        return x @ w.T + b

    def grn(x, w1, b1, w2, b2, w3, b3, w4, b4):
        x1 = lin(jnp.maximum(lin(x, w1, b1), 0.0), w2, b2)
        x2 = jax.nn.sigmoid(lin(jnp.maximum(lin(x, w3, b3), 0.0), w4, b4))
        return x1 * x2

    s_w = jax.nn.softmax(grn(x_static, sw1, sb1, sw2, sb2, sw3, sb3, sw4, sb4), -1)
    static_out = lin(x_static * s_w, sfw, sfb)
    q_w = jax.nn.softmax(grn(x_seq, qw1, qb1, qw2, qb2, qw3, qb3, qw4, qb4), -1)

    B = x_seq.shape[0]
    h = x_seq * q_w
    for layer in range(lstm_layers):
        w_ih, w_hh, b_ih, b_hh = lstm[4 * layer:4 * layer + 4]
        h0 = jnp.zeros((B, H), jnp.float32)
        c0 = jnp.zeros((B, H), jnp.float32)
        gates = lin(h, w_ih, b_ih) + lin(h0, w_hh, b_hh)
        i = jax.nn.sigmoid(gates[:, 0:H])
        f = jax.nn.sigmoid(gates[:, H:2 * H])
        g = jnp.tanh(gates[:, 2 * H:3 * H])
        o = jax.nn.sigmoid(gates[:, 3 * H:4 * H])
        c = f * c0 + i * g
        h = o * jnp.tanh(c)

    # MultiheadAttention with a length-1 sequence: the per-head softmax over a
    # single key is exactly 1, so the attention output is out_proj(V_proj(x)).
    wv, bv = in_w[2 * H:3 * H], in_b[2 * H:3 * H]
    attn = lin(lin(h, wv, bv), ow, ob)

    combined = jnp.concatenate([static_out, attn], axis=-1)
    out = jax.nn.sigmoid(lin(combined, fcw, fcb))
    return out, s_w, q_w


# ----------------------------------------------------------------------------
if __name__ == "__main__":
    # module hyperparameters
    hidden_size = 32
    lstm_layers = 2
    dropout = 0.0               # eval mode: nn.LSTM dropout inactive
    output_size = 1
    attention_head_size = 4     # irrelevant at seq_len == 1 (softmax over 1 key)
    static_input_size = 8
    sequence_input_size = 8
    batch = 2

    key = jax.random.PRNGKey(0)
    k_static, k_seq, k_params = jax.random.split(key, 3)
    x_static = jax.random.normal(k_static, (batch, static_input_size), jnp.float32)
    x_sequence = jax.random.normal(k_seq, (batch, sequence_input_size), jnp.float32)

    params = make_params(k_params, hidden_size, lstm_layers, output_size,
                         static_input_size, sequence_input_size)

    out, static_w, seq_w = tft_forward(
        x_static, x_sequence, params,
        hidden_size=hidden_size, lstm_layers=lstm_layers,
        output_size=output_size)
    jax.block_until_ready((out, static_w, seq_w))

    ref_out, ref_sw, ref_qw = tft_reference(
        x_static, x_sequence, params,
        hidden_size=hidden_size, lstm_layers=lstm_layers)

    # Approx-reciprocal error sources were removed (exact tanh-form sigmoid and
    # exact softmax divide); remaining differences are only matmul association/
    # precision between the transposed kernel and the row-major XLA reference.
    np.testing.assert_allclose(np.asarray(out), np.asarray(ref_out),
                               rtol=2e-3, atol=1e-4)
    np.testing.assert_allclose(np.asarray(static_w), np.asarray(ref_sw),
                               rtol=2e-3, atol=1e-4)
    np.testing.assert_allclose(np.asarray(seq_w), np.asarray(ref_qw),
                               rtol=2e-3, atol=1e-4)
    print("KERNEL_OK")
</pallas_src>

<mosaic_0001>
module attributes {stable_mosaic.version = 11 : i64} {
  func.func @kernel(%arg0: i32, %arg1: memref<8x128xf32, #tpu.memory_space<vmem>>, %arg2: memref<8x128xf32, #tpu.memory_space<vmem>>, %arg3: memref<432x128xf32, #tpu.memory_space<vmem>>, %arg4: memref<424x1xf32, #tpu.memory_space<vmem>>, %arg5: memref<1x128xf32, #tpu.memory_space<vmem>>, %arg6: memref<8x128xf32, #tpu.memory_space<vmem>>, %arg7: memref<8x128xf32, #tpu.memory_space<vmem>>) attributes {dimension_semantics = [#tpu.dimension_semantics<parallel>], iteration_bounds = array<i64: 2>, scalar_prefetch = 0 : i64, scratch_operands = 0 : i64, tpu.core_type = #tpu.core_type<tc>, window_params = [{transform_indices = @transform_0, window_bounds = array<i64: 8, 128>}, {transform_indices = @transform_1, window_bounds = array<i64: 8, 128>}, {pipeline_mode = #tpu.pipeline_mode<synchronous>, transform_indices = @transform_2, window_bounds = array<i64: 432, 128>}, {pipeline_mode = #tpu.pipeline_mode<synchronous>, transform_indices = @transform_3, window_bounds = array<i64: 424, 1>}, {transform_indices = @transform_4, window_bounds = array<i64: 1, 128>}, {transform_indices = @transform_5, window_bounds = array<i64: 8, 128>}, {transform_indices = @transform_6, window_bounds = array<i64: 8, 128>}]} {
    %c0 = arith.constant 0 : index
    %c0_0 = arith.constant 0 : index
    %0 = vector.load %arg1[%c0, %c0_0] : memref<8x128xf32, #tpu.memory_space<vmem>>, vector<8x128xf32>
    %c0_1 = arith.constant 0 : index
    %c0_2 = arith.constant 0 : index
    %1 = vector.load %arg2[%c0_1, %c0_2] : memref<8x128xf32, #tpu.memory_space<vmem>>, vector<8x128xf32>
    %c0_3 = arith.constant 0 : index
    %c0_4 = arith.constant 0 : index
    %2 = vector.load %arg3[%c0_3, %c0_4] : memref<432x128xf32, #tpu.memory_space<vmem>>, vector<64x8xf32>
    %cst = arith.constant dense<0.000000e+00> : vector<64x128xf32>
    %3 = tpu.matmul %2, %0, %cst {dimension_numbers = #tpu.dot_dimension_numbers<[1], [0], [0], [1], [0, 0, 1, 1], [], []>} : vector<64x8xf32>, vector<8x128xf32>, vector<64x128xf32> -> vector<64x128xf32>
    %c0_5 = arith.constant 0 : index
    %c0_6 = arith.constant 0 : index
    %4 = vector.load %arg4[%c0_5, %c0_6] : memref<424x1xf32, #tpu.memory_space<vmem>>, vector<64x1xf32>
    %5 = vector.broadcast %4 : vector<64x1xf32> to vector<64x128xf32>
    %6 = arith.addf %3, %5 : vector<64x128xf32>
    %cst_7 = arith.constant 0.000000e+00 : f32
    %7 = vector.broadcast %cst_7 : f32 to vector<64x128xf32>
    %8 = arith.maximumf %6, %7 : vector<64x128xf32>
    %9 = vector.extract_strided_slice %8 {offsets = [0, 0], sizes = [32, 128], strides = [1, 1]} : vector<64x128xf32> to vector<32x128xf32>
    %c64 = arith.constant 64 : index
    %c0_8 = arith.constant 0 : index
    %10 = vector.load %arg3[%c64, %c0_8] : memref<432x128xf32, #tpu.memory_space<vmem>>, vector<8x32xf32>
    %cst_9 = arith.constant dense<0.000000e+00> : vector<8x128xf32>
    %11 = tpu.matmul %10, %9, %cst_9 {dimension_numbers = #tpu.dot_dimension_numbers<[1], [0], [0], [1], [0, 0, 1, 1], [], []>} : vector<8x32xf32>, vector<32x128xf32>, vector<8x128xf32> -> vector<8x128xf32>
    %c64_10 = arith.constant 64 : index
    %c0_11 = arith.constant 0 : index
    %12 = vector.load %arg4[%c64_10, %c0_11] : memref<424x1xf32, #tpu.memory_space<vmem>>, vector<8x1xf32>
    %13 = vector.broadcast %12 : vector<8x1xf32> to vector<8x128xf32>
    %14 = arith.addf %11, %13 : vector<8x128xf32>
    %15 = vector.extract_strided_slice %8 {offsets = [32, 0], sizes = [32, 128], strides = [1, 1]} : vector<64x128xf32> to vector<32x128xf32>
    %c72 = arith.constant 72 : index
    %c0_12 = arith.constant 0 : index
    %16 = vector.load %arg3[%c72, %c0_12] : memref<432x128xf32, #tpu.memory_space<vmem>>, vector<8x32xf32>
    %cst_13 = arith.constant dense<0.000000e+00> : vector<8x128xf32>
    %17 = tpu.matmul %16, %15, %cst_13 {dimension_numbers = #tpu.dot_dimension_numbers<[1], [0], [0], [1], [0, 0, 1, 1], [], []>} : vector<8x32xf32>, vector<32x128xf32>, vector<8x128xf32> -> vector<8x128xf32>
    %c72_14 = arith.constant 72 : index
    %c0_15 = arith.constant 0 : index
    %18 = vector.load %arg4[%c72_14, %c0_15] : memref<424x1xf32, #tpu.memory_space<vmem>>, vector<8x1xf32>
    %19 = vector.broadcast %18 : vector<8x1xf32> to vector<8x128xf32>
    %20 = arith.addf %17, %19 : vector<8x128xf32>
    %cst_16 = arith.constant 5.000000e-01 : f32
    %21 = vector.broadcast %cst_16 : f32 to vector<8x128xf32>
    %22 = arith.mulf %21, %20 : vector<8x128xf32>
    %23 = math.tanh %22 : vector<8x128xf32>
    %cst_17 = arith.constant 5.000000e-01 : f32
    %24 = vector.broadcast %cst_17 : f32 to vector<8x128xf32>
    %25 = arith.mulf %24, %23 : vector<8x128xf32>
    %cst_18 = arith.constant 5.000000e-01 : f32
    %26 = vector.broadcast %cst_18 : f32 to vector<8x128xf32>
    %27 = arith.addf %25, %26 : vector<8x128xf32>
    %28 = arith.mulf %14, %27 : vector<8x128xf32>
    %cst_19 = arith.constant dense<0xFF800000> : vector<128xf32>
    %29 = vector.multi_reduction <maximumf>, %28, %cst_19 [0] : vector<8x128xf32> to vector<128xf32>
    %30 = vector.shape_cast %29 : vector<128xf32> to vector<1x128xf32>
    %31 = vector.broadcast %30 : vector<1x128xf32> to vector<8x128xf32>
    %32 = arith.subf %28, %31 : vector<8x128xf32>
    %33 = math.exp %32 : vector<8x128xf32>
    %cst_20 = arith.constant dense<0.000000e+00> : vector<128xf32>
    %34 = vector.multi_reduction <add>, %33, %cst_20 [0] : vector<8x128xf32> to vector<128xf32>
    %35 = vector.shape_cast %34 : vector<128xf32> to vector<1x128xf32>
    %36 = vector.broadcast %35 : vector<1x128xf32> to vector<8x128xf32>
    %37 = arith.divf %33, %36 : vector<8x128xf32>
    %c80 = arith.constant 80 : index
    %c0_21 = arith.constant 0 : index
    %38 = vector.load %arg3[%c80, %c0_21] : memref<432x128xf32, #tpu.memory_space<vmem>>, vector<64x8xf32>
    %cst_22 = arith.constant dense<0.000000e+00> : vector<64x128xf32>
    %39 = tpu.matmul %38, %1, %cst_22 {dimension_numbers = #tpu.dot_dimension_numbers<[1], [0], [0], [1], [0, 0, 1, 1], [], []>} : vector<64x8xf32>, vector<8x128xf32>, vector<64x128xf32> -> vector<64x128xf32>
    %c80_23 = arith.constant 80 : index
    %c0_24 = arith.constant 0 : index
    %40 = vector.load %arg4[%c80_23, %c0_24] : memref<424x1xf32, #tpu.memory_space<vmem>>, vector<64x1xf32>
    %41 = vector.broadcast %40 : vector<64x1xf32> to vector<64x128xf32>
    %42 = arith.addf %39, %41 : vector<64x128xf32>
    %cst_25 = arith.constant 0.000000e+00 : f32
    %43 = vector.broadcast %cst_25 : f32 to vector<64x128xf32>
    %44 = arith.maximumf %42, %43 : vector<64x128xf32>
    %45 = vector.extract_strided_slice %44 {offsets = [0, 0], sizes = [32, 128], strides = [1, 1]} : vector<64x128xf32> to vector<32x128xf32>
    %c144 = arith.constant 144 : index
    %c0_26 = arith.constant 0 : index
    %46 = vector.load %arg3[%c144, %c0_26] : memref<432x128xf32, #tpu.memory_space<vmem>>, vector<8x32xf32>
    %cst_27 = arith.constant dense<0.000000e+00> : vector<8x128xf32>
    %47 = tpu.matmul %46, %45, %cst_27 {dimension_numbers = #tpu.dot_dimension_numbers<[1], [0], [0], [1], [0, 0, 1, 1], [], []>} : vector<8x32xf32>, vector<32x128xf32>, vector<8x128xf32> -> vector<8x128xf32>
    %c144_28 = arith.constant 144 : index
    %c0_29 = arith.constant 0 : index
    %48 = vector.load %arg4[%c144_28, %c0_29] : memref<424x1xf32, #tpu.memory_space<vmem>>, vector<8x1xf32>
    %49 = vector.broadcast %48 : vector<8x1xf32> to vector<8x128xf32>
    %50 = arith.addf %47, %49 : vector<8x128xf32>
    %51 = vector.extract_strided_slice %44 {offsets = [32, 0], sizes = [32, 128], strides = [1, 1]} : vector<64x128xf32> to vector<32x128xf32>
    %c152 = arith.constant 152 : index
    %c0_30 = arith.constant 0 : index
    %52 = vector.load %arg3[%c152, %c0_30] : memref<432x128xf32, #tpu.memory_space<vmem>>, vector<8x32xf32>
    %cst_31 = arith.constant dense<0.000000e+00> : vector<8x128xf32>
    %53 = tpu.matmul %52, %51, %cst_31 {dimension_numbers = #tpu.dot_dimension_numbers<[1], [0], [0], [1], [0, 0, 1, 1], [], []>} : vector<8x32xf32>, vector<32x128xf32>, vector<8x128xf32> -> vector<8x128xf32>
    %c152_32 = arith.constant 152 : index
    %c0_33 = arith.constant 0 : index
    %54 = vector.load %arg4[%c152_32, %c0_33] : memref<424x1xf32, #tpu.memory_space<vmem>>, vector<8x1xf32>
    %55 = vector.broadcast %54 : vector<8x1xf32> to vector<8x128xf32>
    %56 = arith.addf %53, %55 : vector<8x128xf32>
    %cst_34 = arith.constant 5.000000e-01 : f32
    %57 = vector.broadcast %cst_34 : f32 to vector<8x128xf32>
    %58 = arith.mulf %57, %56 : vector<8x128xf32>
    %59 = math.tanh %58 : vector<8x128xf32>
    %cst_35 = arith.constant 5.000000e-01 : f32
    %60 = vector.broadcast %cst_35 : f32 to vector<8x128xf32>
    %61 = arith.mulf %60, %59 : vector<8x128xf32>
    %cst_36 = arith.constant 5.000000e-01 : f32
    %62 = vector.broadcast %cst_36 : f32 to vector<8x128xf32>
    %63 = arith.addf %61, %62 : vector<8x128xf32>
    %64 = arith.mulf %50, %63 : vector<8x128xf32>
    %cst_37 = arith.constant dense<0xFF800000> : vector<128xf32>
    %65 = vector.multi_reduction <maximumf>, %64, %cst_37 [0] : vector<8x128xf32> to vector<128xf32>
    %66 = vector.shape_cast %65 : vector<128xf32> to vector<1x128xf32>
    %67 = vector.broadcast %66 : vector<1x128xf32> to vector<8x128xf32>
    %68 = arith.subf %64, %67 : vector<8x128xf32>
    %69 = math.exp %68 : vector<8x128xf32>
    %cst_38 = arith.constant dense<0.000000e+00> : vector<128xf32>
    %70 = vector.multi_reduction <add>, %69, %cst_38 [0] : vector<8x128xf32> to vector<128xf32>
    %71 = vector.shape_cast %70 : vector<128xf32> to vector<1x128xf32>
    %72 = vector.broadcast %71 : vector<1x128xf32> to vector<8x128xf32>
    %73 = arith.divf %69, %72 : vector<8x128xf32>
    %c0_39 = arith.constant 0 : index
    %c0_40 = arith.constant 0 : index
    %74 = vector.load %arg6[%c0_39, %c0_40] : memref<8x128xf32, #tpu.memory_space<vmem>>, vector<8x128xf32>
    tpu.vector_store %arg6[%c0_39, %c0_40], %37 {strides = array<i32>} : memref<8x128xf32, #tpu.memory_space<vmem>>, vector<8x128xf32>,
    %c0_41 = arith.constant 0 : index
    %c0_42 = arith.constant 0 : index
    %75 = vector.load %arg7[%c0_41, %c0_42] : memref<8x128xf32, #tpu.memory_space<vmem>>, vector<8x128xf32>
    tpu.vector_store %arg7[%c0_41, %c0_42], %73 {strides = array<i32>} : memref<8x128xf32, #tpu.memory_space<vmem>>, vector<8x128xf32>,
    %76 = arith.mulf %0, %37 : vector<8x128xf32>
    %c160 = arith.constant 160 : index
    %c0_43 = arith.constant 0 : index
    %77 = vector.load %arg3[%c160, %c0_43] : memref<432x128xf32, #tpu.memory_space<vmem>>, vector<32x8xf32>
    %cst_44 = arith.constant dense<0.000000e+00> : vector<32x128xf32>
    %78 = tpu.matmul %77, %76, %cst_44 {dimension_numbers = #tpu.dot_dimension_numbers<[1], [0], [0], [1], [0, 0, 1, 1], [], []>} : vector<32x8xf32>, vector<8x128xf32>, vector<32x128xf32> -> vector<32x128xf32>
    %c160_45 = arith.constant 160 : index
    %c0_46 = arith.constant 0 : index
    %79 = vector.load %arg4[%c160_45, %c0_46] : memref<424x1xf32, #tpu.memory_space<vmem>>, vector<32x1xf32>
    %80 = vector.broadcast %79 : vector<32x1xf32> to vector<32x128xf32>
    %81 = arith.addf %78, %80 : vector<32x128xf32>
    %82 = arith.mulf %1, %73 : vector<8x128xf32>
    %c192 = arith.constant 192 : index
    %c0_47 = arith.constant 0 : index
    %83 = vector.load %arg3[%c192, %c0_47] : memref<432x128xf32, #tpu.memory_space<vmem>>, vector<96x8xf32>
    %cst_48 = arith.constant dense<0.000000e+00> : vector<96x128xf32>
    %84 = tpu.matmul %83, %82, %cst_48 {dimension_numbers = #tpu.dot_dimension_numbers<[1], [0], [0], [1], [0, 0, 1, 1], [], []>} : vector<96x8xf32>, vector<8x128xf32>, vector<96x128xf32> -> vector<96x128xf32>
    %c192_49 = arith.constant 192 : index
    %c0_50 = arith.constant 0 : index
    %85 = vector.load %arg4[%c192_49, %c0_50] : memref<424x1xf32, #tpu.memory_space<vmem>>, vector<96x1xf32>
    %86 = vector.broadcast %85 : vector<96x1xf32> to vector<96x128xf32>
    %87 = arith.addf %84, %86 : vector<96x128xf32>
    %88 = vector.extract_strided_slice %87 {offsets = [0, 0], sizes = [32, 128], strides = [1, 1]} : vector<96x128xf32> to vector<32x128xf32>
    %cst_51 = arith.constant 5.000000e-01 : f32
    %89 = vector.broadcast %cst_51 : f32 to vector<32x128xf32>
    %90 = arith.mulf %89, %88 : vector<32x128xf32>
    %91 = math.tanh %90 : vector<32x128xf32>
    %cst_52 = arith.constant 5.000000e-01 : f32
    %92 = vector.broadcast %cst_52 : f32 to vector<32x128xf32>
    %93 = arith.mulf %92, %91 : vector<32x128xf32>
    %cst_53 = arith.constant 5.000000e-01 : f32
    %94 = vector.broadcast %cst_53 : f32 to vector<32x128xf32>
    %95 = arith.addf %93, %94 : vector<32x128xf32>
    %96 = vector.extract_strided_slice %87 {offsets = [32, 0], sizes = [32, 128], strides = [1, 1]} : vector<96x128xf32> to vector<32x128xf32>
    %97 = math.tanh %96 : vector<32x128xf32>
    %98 = vector.extract_strided_slice %87 {offsets = [64, 0], sizes = [32, 128], strides = [1, 1]} : vector<96x128xf32> to vector<32x128xf32>
    %cst_54 = arith.constant 5.000000e-01 : f32
    %99 = vector.broadcast %cst_54 : f32 to vector<32x128xf32>
    %100 = arith.mulf %99, %98 : vector<32x128xf32>
    %101 = math.tanh %100 : vector<32x128xf32>
    %cst_55 = arith.constant 5.000000e-01 : f32
    %102 = vector.broadcast %cst_55 : f32 to vector<32x128xf32>
    %103 = arith.mulf %102, %101 : vector<32x128xf32>
    %cst_56 = arith.constant 5.000000e-01 : f32
    %104 = vector.broadcast %cst_56 : f32 to vector<32x128xf32>
    %105 = arith.addf %103, %104 : vector<32x128xf32>
    %106 = arith.mulf %95, %97 : vector<32x128xf32>
    %107 = math.tanh %106 : vector<32x128xf32>
    %108 = arith.mulf %105, %107 : vector<32x128xf32>
    %c288 = arith.constant 288 : index
    %c0_57 = arith.constant 0 : index
    %109 = vector.load %arg3[%c288, %c0_57] : memref<432x128xf32, #tpu.memory_space<vmem>>, vector<96x32xf32>
    %cst_58 = arith.constant dense<0.000000e+00> : vector<96x128xf32>
    %110 = tpu.matmul %109, %108, %cst_58 {dimension_numbers = #tpu.dot_dimension_numbers<[1], [0], [0], [1], [0, 0, 1, 1], [], []>} : vector<96x32xf32>, vector<32x128xf32>, vector<96x128xf32> -> vector<96x128xf32>
    %c288_59 = arith.constant 288 : index
    %c0_60 = arith.constant 0 : index
    %111 = vector.load %arg4[%c288_59, %c0_60] : memref<424x1xf32, #tpu.memory_space<vmem>>, vector<96x1xf32>
    %112 = vector.broadcast %111 : vector<96x1xf32> to vector<96x128xf32>
    %113 = arith.addf %110, %112 : vector<96x128xf32>
    %114 = vector.extract_strided_slice %113 {offsets = [0, 0], sizes = [32, 128], strides = [1, 1]} : vector<96x128xf32> to vector<32x128xf32>
    %cst_61 = arith.constant 5.000000e-01 : f32
    %115 = vector.broadcast %cst_61 : f32 to vector<32x128xf32>
    %116 = arith.mulf %115, %114 : vector<32x128xf32>
    %117 = math.tanh %116 : vector<32x128xf32>
    %cst_62 = arith.constant 5.000000e-01 : f32
    %118 = vector.broadcast %cst_62 : f32 to vector<32x128xf32>
    %119 = arith.mulf %118, %117 : vector<32x128xf32>
    %cst_63 = arith.constant 5.000000e-01 : f32
    %120 = vector.broadcast %cst_63 : f32 to vector<32x128xf32>
    %121 = arith.addf %119, %120 : vector<32x128xf32>
    %122 = vector.extract_strided_slice %113 {offsets = [32, 0], sizes = [32, 128], strides = [1, 1]} : vector<96x128xf32> to vector<32x128xf32>
    %123 = math.tanh %122 : vector<32x128xf32>
    %124 = vector.extract_strided_slice %113 {offsets = [64, 0], sizes = [32, 128], strides = [1, 1]} : vector<96x128xf32> to vector<32x128xf32>
    %cst_64 = arith.constant 5.000000e-01 : f32
    %125 = vector.broadcast %cst_64 : f32 to vector<32x128xf32>
    %126 = arith.mulf %125, %124 : vector<32x128xf32>
    %127 = math.tanh %126 : vector<32x128xf32>
    %cst_65 = arith.constant 5.000000e-01 : f32
    %128 = vector.broadcast %cst_65 : f32 to vector<32x128xf32>
    %129 = arith.mulf %128, %127 : vector<32x128xf32>
    %cst_66 = arith.constant 5.000000e-01 : f32
    %130 = vector.broadcast %cst_66 : f32 to vector<32x128xf32>
    %131 = arith.addf %129, %130 : vector<32x128xf32>
    %132 = arith.mulf %121, %123 : vector<32x128xf32>
    %133 = math.tanh %132 : vector<32x128xf32>
    %134 = arith.mulf %131, %133 : vector<32x128xf32>
    %c384 = arith.constant 384 : index
    %c0_67 = arith.constant 0 : index
    %135 = vector.load %arg3[%c384, %c0_67] : memref<432x128xf32, #tpu.memory_space<vmem>>, vector<32x32xf32>
    %cst_68 = arith.constant dense<0.000000e+00> : vector<32x128xf32>
    %136 = tpu.matmul %135, %134, %cst_68 {dimension_numbers = #tpu.dot_dimension_numbers<[1], [0], [0], [1], [0, 0, 1, 1], [], []>} : vector<32x32xf32>, vector<32x128xf32>, vector<32x128xf32> -> vector<32x128xf32>
    %c384_69 = arith.constant 384 : index
    %c0_70 = arith.constant 0 : index
    %137 = vector.load %arg4[%c384_69, %c0_70] : memref<424x1xf32, #tpu.memory_space<vmem>>, vector<32x1xf32>
    %138 = vector.broadcast %137 : vector<32x1xf32> to vector<32x128xf32>
    %139 = arith.addf %136, %138 : vector<32x128xf32>
    %c416 = arith.constant 416 : index
    %c0_71 = arith.constant 0 : index
    %140 = vector.load %arg3[%c416, %c0_71] : memref<432x128xf32, #tpu.memory_space<vmem>>, vector<1x32xf32>
    %cst_72 = arith.constant dense<0.000000e+00> : vector<1x128xf32>
    %141 = tpu.matmul %140, %81, %cst_72 {dimension_numbers = #tpu.dot_dimension_numbers<[1], [0], [0], [1], [0, 0, 1, 1], [], []>} : vector<1x32xf32>, vector<32x128xf32>, vector<1x128xf32> -> vector<1x128xf32>
    %c424 = arith.constant 424 : index
    %c0_73 = arith.constant 0 : index
    %142 = vector.load %arg3[%c424, %c0_73] : memref<432x128xf32, #tpu.memory_space<vmem>>, vector<1x32xf32>
    %cst_74 = arith.constant dense<0.000000e+00> : vector<1x128xf32>
    %143 = tpu.matmul %142, %139, %cst_74 {dimension_numbers = #tpu.dot_dimension_numbers<[1], [0], [0], [1], [0, 0, 1, 1], [], []>} : vector<1x32xf32>, vector<32x128xf32>, vector<1x128xf32> -> vector<1x128xf32>
    %144 = arith.addf %141, %143 : vector<1x128xf32>
    %c416_75 = arith.constant 416 : index
    %c0_76 = arith.constant 0 : index
    %145 = vector.load %arg4[%c416_75, %c0_76] : memref<424x1xf32, #tpu.memory_space<vmem>>, vector<1x1xf32>
    %146 = vector.broadcast %145 : vector<1x1xf32> to vector<1x128xf32>
    %147 = arith.addf %144, %146 : vector<1x128xf32>
    %cst_77 = arith.constant 5.000000e-01 : f32
    %148 = vector.broadcast %cst_77 : f32 to vector<1x128xf32>
    %149 = arith.mulf %148, %147 : vector<1x128xf32>
    %150 = math.tanh %149 : vector<1x128xf32>
    %cst_78 = arith.constant 5.000000e-01 : f32
    %151 = vector.broadcast %cst_78 : f32 to vector<1x128xf32>
    %152 = arith.mulf %151, %150 : vector<1x128xf32>
    %cst_79 = arith.constant 5.000000e-01 : f32
    %153 = vector.broadcast %cst_79 : f32 to vector<1x128xf32>
    %154 = arith.addf %152, %153 : vector<1x128xf32>
    %c0_80 = arith.constant 0 : index
    %c0_81 = arith.constant 0 : index
    %155 = vector.load %arg5[%c0_80, %c0_81] : memref<1x128xf32, #tpu.memory_space<vmem>>, vector<1x128xf32>
    tpu.vector_store %arg5[%c0_80, %c0_81], %154 {strides = array<i32>} : memref<1x128xf32, #tpu.memory_space<vmem>>, vector<1x128xf32>,
    return
  }
  func.func @transform_0(%arg0: i32) -> (i32, i32) {
    %c0_i32 = arith.constant 0 : i32
    %c0_i32_0 = arith.constant 0 : i32
    return %c0_i32, %arg0 : i32, i32
  }
  func.func @transform_1(%arg0: i32) -> (i32, i32) {
    %c0_i32 = arith.constant 0 : i32
    %c0_i32_0 = arith.constant 0 : i32
    return %c0_i32, %arg0 : i32, i32
  }
  func.func @transform_2(%arg0: i32) -> (i32, i32) {
    %c0_i32 = arith.constant 0 : i32
    %c0_i32_0 = arith.constant 0 : i32
    %c0_i32_1 = arith.constant 0 : i32
    return %c0_i32, %c0_i32_0 : i32, i32
  }
  func.func @transform_3(%arg0: i32) -> (i32, i32) {
    %c0_i32 = arith.constant 0 : i32
    %c0_i32_0 = arith.constant 0 : i32
    %c0_i32_1 = arith.constant 0 : i32
    return %c0_i32, %c0_i32_0 : i32, i32
  }
  func.func @transform_4(%arg0: i32) -> (i32, i32) {
    %c0_i32 = arith.constant 0 : i32
    %c0_i32_0 = arith.constant 0 : i32
    return %c0_i32, %arg0 : i32, i32
  }
  func.func @transform_5(%arg0: i32) -> (i32, i32) {
    %c0_i32 = arith.constant 0 : i32
    %c0_i32_0 = arith.constant 0 : i32
    return %c0_i32, %arg0 : i32, i32
  }
  func.func @transform_6(%arg0: i32) -> (i32, i32) {
    %c0_i32 = arith.constant 0 : i32
    %c0_i32_0 = arith.constant 0 : i32
    return %c0_i32, %arg0 : i32, i32
  }
}

</mosaic_0001>

<bundles_post_ra>
// kernel: tpu_custom_call.1
= control target key start
LH: loop header
LB: loop body
LE: loop exit
PB: predicated region body
PF: predicated region fallthrough
CT: control target
= control target key end

     0   :  { %s2420_s0 = inlined_call_operand.vmem [shape: f32[8,256], index: 0, kind: input, shape index: {}]   ;;  %s2421_s1 = inlined_call_operand.vmem [shape: f32[8,256], index: 1, kind: input, shape index: {}]   ;;  %s2422_s2 = inlined_call_operand.hbm [shape: f32[432,128], index: 2, kind: input, shape index: {}]   ;;  %s2423_s3 = inlined_call_operand.vmem [shape: f32[424,1], index: 3, kind: input, shape index: {}]   ;;  %s2424_s4 = inlined_call_operand.hbm [shape: f32[1,256], index: 4, kind: output, shape index: {0}]   ;;  %s2425_s5 = inlined_call_operand.hbm [shape: f32[8,256], index: 5, kind: output, shape index: {1}]   ;;  %s2426_s6 = inlined_call_operand.hbm [shape: f32[8,256], index: 6, kind: output, shape index: {2}]  }
   0x1   :  { %2428 = sst [smem:[#allocation12_spill]] %s2420_s0 }
   0x2   :  { %2429 = sst [smem:[#allocation13_spill]] %s2421_s1 }
   0x3   :  { %12 = vsyncpa [#allocation3], 0 }
   0x4   :  { %13 = vsyncpa [#allocation4], 0 }
   0x5   :  { %15 = vsyncpa [#allocation4 + $0x1], 0 }
   0x6   :  { %16 = vsyncpa [#allocation7], 0 }
   0x7   :  { %18 = vsyncpa [#allocation7 + $0x1], 0  ;;  %s1998_s21 = smov 0   ;;  %s2000_s22 = smov 0  }
   0x8   :  { %s2002_s23 = smov 0   ;;  %s2004_s24 = smov 0  }
   0x9 LB: > { %s2019_s25 = sadd.s32 4294967295, %s1957_s24   ;;  %s2427_s26 = sadd.s32 4294967294, %s1957_s24   ;;  %s1957_s24 = sphi %s2004_s24, %s2438_s24   ;;  %s1953_s23 = sphi %s2002_s23, %s2437_s23   ;;  %s1949_s22 = sphi %s2000_s22, %s2436_s22   ;;  %s1945_s21 = sphi %s1998_s21, %s2435_s21  }
   0xa   : > { %s2023_s27 = sadd.s32 1, %s1957_s24   ;;  %s125_s28 = sadd.s32 1, %s1953_s23 }
   0xb   : > { %s122_s29 = ssub.s32 %s1957_s24, %s2023_s27  ;;  %p135_p0 = scmp.ne.s32.totalorder %s1953_s23, %s1949_s22 }
   0xc   : > { %p123_p1 = scmp.eq.s32.totalorder %s122_s29, 0  ;;  %p136_p2 = scmp.eq.s32.totalorder %s2019_s25, 1 }
   0xd   : > { %p141_p3 = scmp.ne.s32.totalorder %s1949_s22, %s1945_s21  ;;  %p142_p4 = scmp.eq.s32.totalorder %s2427_s26, 1 }
   0xe   : > { %s2036_s30 = scalar_select %p123_p1, %s1953_s23, %s125_s28  }
   0xf   : > { %p2038_p5 = por %p136_p2, %p135_p0  ;;  %p2042_p6 = por %p142_p4, %p141_p3 }
  0x10   : > { %p1588_p7 = scmp.ge.s32.totalorder %s1957_s24, 1  ;;  %p201_p8 = scmp.lt.s32.totalorder %s1957_s24, 3 }
  0x11   : > { %p1681_p9 = scmp.eq.s32.totalorder %s2019_s25, 0  ;;  %s212_s11 = sshll.u32 %s2422_s2, 4  ;;  %s213_s11 = int_to_ptr.hbm [resolvable:$true] %s212_s11 }
  0x12   : > { %p202_p10 = pnand %p1588_p7, %p201_p8  ;;  %s1959_s12 = smov [#allocation2]  }
  0x13   : > { %s214_s13 = sshll.u32 %s1959_s12, 4  ;;  %s1960_s14 = smov 128   ;;  %s215_s13 = int_to_ptr.vmem [resolvable:$true] %s214_s13 }
  0x14   : > { %p1667_p11 = pneg %p202_p10  ;;  %s1961_s15 = smov 8  }
  0x15   : > { %247 = sbr.rel (%p202_p10) target bundleno = 1242 (0x4da), region = 36 }
  0x16   : > { %p1668_p12 = pnand %p1681_p9, %p1667_p11 }
  0x18   : > { %1670 = dma.hbm_to_vmem [thread:$0]  (!%p1668_p12), %s213_s11, 6912, %s215_s13, [#allocation3], %s1960_s14, %s1960_s14, %s1961_s15  }
  0x1a   : > { %1932 = dma.done.wait (%p1681_p9), [#allocation3], 6912  }
  0x1b   : > { %1934 = vsyncadd (%p1681_p9), [#allocation3], 4294960384  ;;  %p290_p13 = scmp.lt.s32.totalorder %s2019_s25, 1  ;;  %v1962_v0 = vmov 0   ;;  %s2432_s1 = sld [smem:[#allocation13_spill]]  ;;  %v541_v1 = vld [vmem:[%s2423_s3 + $0x88] sm:$0xff] }
  0x1c   : > { %1722 = vset.pattern.permute.xlu2 %v1962_v0  ;;  %1721 = vset.pattern.permute.xlu1 %v1962_v0  ;;  %s2433_s0 = sld [smem:[#allocation12_spill]]  ;;  %v539_v2 = vld [vmem:[%s2423_s3 + $0x78] sm:$0xff]  ;;  %v537_v3 = vld [vmem:[%s2423_s3 + $0x68] sm:$0xff]  ;;  %vm356_vm0 = vcmask 64512   ;;  %v526_v5 = vld [vmem:[#allocation2 + $0x50] sm:$0xff]  ;;  %vm437_vm1 = vcmask 261120  }
  0x1d   : > { %1720 = vset.pattern.permute.xlu0 %v1962_v0  ;;  %s291_s16 = scalar_select %p290_p13, %s2019_s25, 1  ;;  %569 = vperm.xlu1 %1721, %v539_v2   ;;  %v300_v7 = vld [vmem:[#allocation2] sm:$0xff]  ;;  %v538_v9 = vld [vmem:[%s2423_s3 + $0x70] sm:$0xff]  ;;  %v527_v11 = vld [vmem:[#allocation2 + $0x58] sm:$0xff] }
  0x1e   : > { %579 = vperm.xlu0 %1720, %v541_v1   ;;  %559 = vperm.xlu2 %1722, %v537_v3   ;;  %v540_v8 = vld [vmem:[%s2423_s3 + $0x80] sm:$0xff]  ;;  %v301_v12 = vld [vmem:[#allocation2 + $0x8] sm:$0xff]  ;;  %v535_v13 = vld [vmem:[%s2423_s3 + $0x58] sm:$0xff]  ;;  %s2294_s18 = sand.u32 1, %s1949_s22   ;;  %s1653_s29 = sshll.u32 %s2019_s25, 3 }
  0x1f   : > { %s1595_s17 = sshll.u32 %s291_s16, 3  ;;  %v536_v10 = vld [vmem:[%s2423_s3 + $0x60] sm:$0xff]  ;;  %v534_v14 = vld [vmem:[%s2423_s3 + $0x50] sm:$0xff]  ;;  %v686_v15 = vld [vmem:[%s2423_s3 + $0x98] sm:$0xff]  ;;  %s1593_s19 = sshll.u32 %s2294_s18, 3 }
  0x20   : > { %v528_v16 = vld [vmem:[#allocation2 + $0x60] sm:$0xff]  ;;  %v302_v17 = vld [vmem:[#allocation2 + $0x10] sm:$0xff]  ;;  %v838_v19 = vld [vmem:[%s2423_s3 + $0xd8] sm:$0xff]  ;;  %s2303_s28 = scalar_lea.vmem [#allocation8], %s1593_s19  ;;  %s1427_s12 = scalar_lea.hbm %s2425_s5, %s1653_s29 }
  0x21   : > { %s297_s20 = scalar_lea.vmem %s2432_s1, %s1595_s17  ;;  %v656_v18 = vld [vmem:[%s2423_s3 + $0x90] sm:$0xff]  ;;  %v529_v21 = vld [vmem:[#allocation2 + $0x68] sm:$0xff]  ;;  %v303_v22 = vld [vmem:[#allocation2 + $0x18] sm:$0xff]  ;;  %s1431_s14 = sshll.u32 %s1427_s12, 4  ;;  %s1432_s14 = int_to_ptr.hbm [resolvable:$true] %s1431_s14 }
  0x22   : > { %s293_s9 = scalar_lea.vmem %s2433_s0, %s1595_s17  ;;  %v2075_v4 = vld [vmem:[%s297_s20] sm:$0xff]  ;;  %v837_v20 = vld [vmem:[%s2423_s3 + $0xd0] sm:$0xff]  ;;  %v836_v23 = vld [vmem:[%s2423_s3 + $0xc8] sm:$0xff]  ;;  %s2298_s20 = scalar_lea.vmem [#allocation6], %s1593_s19 }
  0x23   : > { %v2077_v6 = vld [vmem:[%s293_s9] sm:$0xff]  ;;  %621 = vmatpush.msra.mxu3 %v2075_v4  ;;  %v842_v25 = vld [vmem:[%s2423_s3 + $0xf8] sm:$0xff]  ;;  %v530_v26 = vld [vmem:[#allocation2 + $0x70] sm:$0xff]  ;;  %s1398_s9 = sand.u32 1, %s2019_s25   ;;  %s1429_s13 = sshll.u32 %s2298_s20, 4  ;;  %s1430_s13 = int_to_ptr.vmem [resolvable:$true] %s1429_s13 }
  0x24   : > { %1607 = vmatmul.msk.f32.vlgmr.msra.gmra.mxu3 %vm356_vm0, %v526_v5  ;;  %396 = vmatpush.msra.mxu0 %v2077_v6  ;;  %v835_v24 = vld [vmem:[%s2423_s3 + $0xc0] sm:$0xff]  ;;  %v841_v28 = vld [vmem:[%s2423_s3 + $0xf0] sm:$0xff]  ;;  %v846_v29 = vld [vmem:[%s2423_s3 + $0x118] sm:$0xff]  ;;  %s1441_s17 = scalar_lea.hbm %s2426_s6, %s1653_s29  ;;  %s2360_s19 = scalar_lea.sflag [#allocation7], %s1398_s9 }
  0x25   : > { %1597 = vmatmul.msk.f32.vlgmr.msra.gmra.mxu0 %vm356_vm0, %v300_v7  ;;  %564 = vperm.xlu1 %1721, %v538_v9   ;;  %v304_v27 = vld [vmem:[#allocation2 + $0x20] sm:$0xff]  ;;  %v840_v30 = vld [vmem:[%s2423_s3 + $0xe8] sm:$0xff]  ;;  %v531_v31 = vld [vmem:[#allocation2 + $0x78] sm:$0xff]  ;;  %s1845_s26 = sshra.s32 %s1432_s14, 4  ;;  %s1846_s26 = int_to_ptr.hbm [resolvable:$true] %s1845_s26 }
  0x26   : > { %574 = vperm.xlu0 %1720, %v540_v8   ;;  %554 = vperm.xlu2 %1722, %v536_v10   ;;  %v305_v32 = vld [vmem:[#allocation2 + $0x28] sm:$0xff]  ;;  %v845_v33 = vld [vmem:[%s2423_s3 + $0x110] sm:$0xff]  ;;  %v839_v34 = vld [vmem:[%s2423_s3 + $0xe0] sm:$0xff]  ;;  %s1847_s0 = scalar_lea.hbm %s1846_s26, 8  ;;  %p1852_p3 = scmp.lt.s32.totalorder %s1846_s26, %s2425_s5 }
  0x27   : > { %v844_v35 = vld [vmem:[%s2423_s3 + $0x108] sm:$0xff]  ;;  %v532_v36 = vld [vmem:[#allocation2 + $0x80] sm:$0xff]  ;;  %v306_v37 = vld [vmem:[#allocation2 + $0x30] sm:$0xff]  ;;  %p1848_p0 = scmp.ne.s32.totalorder %s1846_s26, %s1847_s0 }
  0x28   : > { %v843_v38 = vld [vmem:[%s2423_s3 + $0x100] sm:$0xff]  ;;  %v311_v39 = vld [vmem:[%s2423_s3 + $0x18] sm:$0xff]  ;;  %v310_v40 = vld [vmem:[%s2423_s3 + $0x10] sm:$0xff] }
  0x29   : > { %v533_v41 = vld [vmem:[#allocation2 + $0x88] sm:$0xff]  ;;  %v307_v42 = vld [vmem:[#allocation2 + $0x38] sm:$0xff]  ;;  %v308_v44 = vld [vmem:[%s2423_s3] sm:$0xff]  ;;  %p1849_p1 = pnand %p1848_p0, %p2038_p5 }
  0x2a   : > { %v309_v43 = vld [vmem:[%s2423_s3 + $0x8] sm:$0xff]  ;;  %v315_v45 = vld [vmem:[%s2423_s3 + $0x38] sm:$0xff]  ;;  %v314_v46 = vld [vmem:[%s2423_s3 + $0x30] sm:$0xff] }
  0x2b   : > { %v313_v47 = vld [vmem:[%s2423_s3 + $0x28] sm:$0xff]  ;;  %v312_v48 = vld [vmem:[%s2423_s3 + $0x20] sm:$0xff]  ;;  %v1059_v51 = vld [vmem:[%s2423_s3 + $0x138] sm:$0xff]  ;;  %p1850_p2 = pneg %p1849_p1 }
  0x2c   : > { %1608 = vmatmul.msk.f32.gmra.mxu3 %vm356_vm0, %v527_v11  ;;  %v462_v49 = vld [vmem:[%s2423_s3 + $0x48] sm:$0xff]  ;;  %v431_v50 = vld [vmem:[%s2423_s3 + $0x40] sm:$0xff]  ;;  %v1058_v52 = vld [vmem:[%s2423_s3 + $0x130] sm:$0xff] }
  0x2d   : > { %1598 = vmatmul.msk.f32.gmra.mxu0 %vm356_vm0, %v301_v12  ;;  %544 = vperm.xlu1 %1721, %v534_v14   ;;  %v1057_v53 = vld [vmem:[%s2423_s3 + $0x128] sm:$0xff]  ;;  %v1056_v54 = vld [vmem:[%s2423_s3 + $0x120] sm:$0xff]  ;;  %v1063_v55 = vld [vmem:[%s2423_s3 + $0x158] sm:$0xff] }
  0x2e   : > { %549 = vperm.xlu0 %1720, %v535_v13   ;;  %689 = vperm.xlu2 %1722, %v686_v15   ;;  %v1062_v56 = vld [vmem:[%s2423_s3 + $0x150] sm:$0xff]  ;;  %v1067_v57 = vld [vmem:[%s2423_s3 + $0x178] sm:$0xff]  ;;  %v1061_v59 = vld [vmem:[%s2423_s3 + $0x148] sm:$0xff] }
  0x2f   : > { %v1066_v60 = vld [vmem:[%s2423_s3 + $0x170] sm:$0xff]  ;;  %v1060_v61 = vld [vmem:[%s2423_s3 + $0x140] sm:$0xff]  ;;  %v1065_v63 = vld [vmem:[%s2423_s3 + $0x168] sm:$0xff] }
  0x30   : > { %v1064_v0 = vld [vmem:[%s2423_s3 + $0x160] sm:$0xff]  ;;  %v1272_v1 = vld [vmem:[%s2423_s3 + $0x198] sm:$0xff]  ;;  %v1271_v7 = vld [vmem:[%s2423_s3 + $0x190] sm:$0xff] }
  0x31   : > { %v1270_v8 = vld [vmem:[%s2423_s3 + $0x188] sm:$0xff]  ;;  %v1269_v9 = vld [vmem:[%s2423_s3 + $0x180] sm:$0xff]  ;;  %v760_v13 = vld [vmem:[%s2423_s3 + $0xb8] sm:$0xff] }
  0x32   : > { %v759_v14 = vld [vmem:[%s2423_s3 + $0xb0] sm:$0xff]  ;;  %v758_v15 = vld [vmem:[%s2423_s3 + $0xa8] sm:$0xff] }
  0x34   : > { %1609 = vmatmul.msk.f32.gmra.mxu3 %vm356_vm0, %v528_v16 }
  0x35   : > { %1599 = vmatmul.msk.f32.gmra.mxu0 %vm356_vm0, %v302_v17  ;;  %864 = vperm.xlu1 %1721, %v838_v19  }
  0x36   : > { %659 = vperm.xlu0 %1720, %v656_v18   ;;  %859 = vperm.xlu2 %1722, %v837_v20   ;;  %v757_v20 = vld [vmem:[%s2423_s3 + $0xa0] sm:$0xff] }
  0x3c   : > { %1610 = vmatmul.msk.f32.gmra.mxu3 %vm356_vm0, %v529_v21  ;;  %v1382_v21 = vld [vmem:[%s2423_s3 + $0x1a0] sm:$0x1] }
  0x3d   : > { %1600 = vmatmul.msk.f32.gmra.mxu0 %vm356_vm0, %v303_v22  ;;  %849 = vperm.xlu1 %1721, %v835_v24  }
  0x3e   : > { %854 = vperm.xlu0 %1720, %v836_v23   ;;  %884 = vperm.xlu2 %1722, %v842_v25  }
  0x44   : > { %1611 = vmatmul.msk.f32.gmra.mxu3 %vm356_vm0, %v530_v26 }
  0x45   : > { %1601 = vmatmul.msk.f32.gmra.mxu0 %vm356_vm0, %v304_v27  ;;  %904 = vperm.xlu1 %1721, %v846_v29  }
  0x46   : > { %879 = vperm.xlu0 %1720, %v841_v28   ;;  %874 = vperm.xlu2 %1722, %v840_v30  }
  0x4c   : > { %1612 = vmatmul.msk.f32.gmra.mxu3 %vm356_vm0, %v531_v31 }
  0x4d   : > { %1602 = vmatmul.msk.f32.gmra.mxu0 %vm356_vm0, %v305_v32  ;;  %869 = vperm.xlu1 %1721, %v839_v34  }
  0x4e   : > { %899 = vperm.xlu0 %1720, %v845_v33   ;;  %894 = vperm.xlu2 %1722, %v844_v35  }
  0x54   : > { %1613 = vmatmul.msk.f32.gmra.mxu3 %vm356_vm0, %v532_v36 }
  0x55   : > { %1603 = vmatmul.msk.f32.gmra.mxu0 %vm356_vm0, %v306_v37  ;;  %333 = vperm.xlu1 %1721, %v311_v39  }
  0x56   : > { %889 = vperm.xlu0 %1720, %v843_v38   ;;  %328 = vperm.xlu2 %1722, %v310_v40  }
  0x5c   : > { %1614 = vmatmul.msk.f32.gmra.mxu3 %vm356_vm0, %v533_v41 }
  0x5d   : > { %1604 = vmatmul.msk.f32.gmra.mxu0 %vm356_vm0, %v307_v42  ;;  %318 = vperm.xlu1 %1721, %v308_v44  }
  0x5e   : > { %323 = vperm.xlu0 %1720, %v309_v43   ;;  %353 = vperm.xlu2 %1722, %v315_v45  }
  0x65   : > { %343 = vperm.xlu1 %1721, %v313_v47  }
  0x66   : > { %348 = vperm.xlu0 %1720, %v314_v46   ;;  %338 = vperm.xlu2 %1722, %v312_v48  }
  0x6d   : > { %434 = vperm.xlu1 %1721, %v431_v50   ;;  %v655_v50 = vld [vmem:[#allocation2 + $0x90] sm:$0xff] }
  0x6e   : > { %465 = vperm.xlu0 %1720, %v462_v49   ;;  %1085 = vperm.xlu2 %1722, %v1059_v51  }
  0x75   : > { %1075 = vperm.xlu1 %1721, %v1057_v53  }
  0x76   : > { %1080 = vperm.xlu0 %1720, %v1058_v52   ;;  %1070 = vperm.xlu2 %1722, %v1056_v54  }
  0x78   : > { %v560_v58 = vpop.permute.xlu2 %559 }
  0x7d   : > { %1100 = vperm.xlu1 %1721, %v1062_v56  }
  0x7e   : > { %1105 = vperm.xlu0 %1720, %v1063_v55   ;;  %1125 = vperm.xlu2 %1722, %v1067_v57  }
  0x80   : > { %v555_v62 = vpop.permute.xlu2 %554 }
  0x85   : > { %1120 = vperm.xlu1 %1721, %v1066_v60  }
  0x86   : > { %1095 = vperm.xlu0 %1720, %v1061_v59   ;;  %1090 = vperm.xlu2 %1722, %v1060_v61  }
  0x88   : > { %v2227_v5 = vpop.permute.xlu2 %689 }
  0x8d   : > { %1110 = vperm.xlu1 %1721, %v1064_v0  }
  0x8e   : > { %1115 = vperm.xlu0 %1720, %v1065_v63   ;;  %1290 = vperm.xlu2 %1722, %v1272_v1  }
  0x8f   : > { %v2225_v3 = vpop.permute.xlu1 %569 }
  0x90   : > { %v2223_v2 = vpop.permute.xlu0 %579  ;;  %v2242_v12 = vpop.permute.xlu2 %859 }
  0x95   : > { %1280 = vperm.xlu1 %1721, %v1270_v8  }
  0x96   : > { %1285 = vperm.xlu0 %1720, %v1271_v7   ;;  %1275 = vperm.xlu2 %1722, %v1269_v9   ;;  %v430_v9 = vld [vmem:[#allocation2 + $0x40] sm:$0xff] }
  0x97   : > { %v2240_v11 = vpop.permute.xlu1 %564 }
  0x98   : > { %v2238_v10 = vpop.permute.xlu0 %574  ;;  %v2259_v22 = vpop.permute.xlu2 %884 }
  0x9d   : > { %773 = vperm.xlu1 %1721, %v759_v14  }
  0x9e   : > { %778 = vperm.xlu0 %1720, %v760_v13   ;;  %768 = vperm.xlu2 %1722, %v758_v15  }
  0x9f   : > { %v545_v18 = vpop.permute.xlu1 %544 }
  0xa0   : > { %v550_v17 = vpop.permute.xlu0 %549  ;;  %v2265_v28 = vpop.permute.xlu2 %874 }
  0xa2   : > { %v398_v16 = vpop.f32.mrf.mxu0 }
  0xa5   : > { %1385 = vperm.xlu1 %1721, %v1382_v21  }
  0xa6   : > { %763 = vperm.xlu0 %1720, %v757_v20  }
  0xa7   : > { %v623_v19 = vpop.f32.mrf.mxu3  ;;  %v2263_v25 = vpop.permute.xlu1 %864 }
  0xa8   : > { %v2261_v24 = vpop.permute.xlu0 %659  ;;  %v2275_v35 = vpop.permute.xlu2 %894  ;;  %v624_v42 = vadd.f32 %v623_v19, %v545_v18 }
  0xaa   : > { %v401_v23 = vpop.f32.mrf.mxu0  ;;  %v647_v49 = vmax.f32 %v624_v42, 0.0 }
  0xaf   : > { %v626_v26 = vpop.f32.mrf.mxu3  ;;  %v2269_v30 = vpop.permute.xlu1 %849 }
  0xb0   : > { %v2267_v29 = vpop.permute.xlu0 %854  ;;  %v627_v39 = vadd.f32 %v626_v26, %v550_v17  ;;  %v329_v47 = vpop.permute.xlu2 %328 }
  0xb2   : > { %v404_v27 = vpop.f32.mrf.mxu0  ;;  %v648_v46 = vmax.f32 %v627_v39, 0.0  ;;  %v461_v39 = vld [vmem:[#allocation2 + $0x48] sm:$0xff] }
  0xb3   : > { %v405_v52 = vadd.f32 %v404_v27, %v329_v47 }
  0xb5   : > { %v424_v56 = vmax.f32 %v405_v52, 0.0 }
  0xb7   : > { %v629_v31 = vpop.f32.mrf.mxu3  ;;  %v2273_v34 = vpop.permute.xlu1 %904 }
  0xb8   : > { %v2271_v33 = vpop.permute.xlu0 %879  ;;  %v630_v37 = vadd.f32 %v629_v31, %v555_v62  ;;  %v354_v59 = vpop.permute.xlu2 %353 }
  0xba   : > { %v407_v32 = vpop.f32.mrf.mxu0  ;;  %v649_v43 = vmax.f32 %v630_v37, 0.0 }
  0xbf   : > { %v632_v36 = vpop.f32.mrf.mxu3  ;;  %v2279_v45 = vpop.permute.xlu1 %869 }
  0xc0   : > { %v633_v38 = vadd.f32 %v632_v36, %v560_v58  ;;  %v2277_v44 = vpop.permute.xlu0 %899  ;;  %v339_v14 = vpop.permute.xlu2 %338 }
  0xc2   : > { %v410_v40 = vpop.f32.mrf.mxu0  ;;  %v650_v41 = vmax.f32 %v633_v38, 0.0 }
  0xc3   : > { %v411_v19 = vadd.f32 %v410_v40, %v339_v14 }
  0xc4   : > { %677 = vmatpush.msra.mxu1 %v650_v41 }
  0xc6   : > { %678 = vmatpush.msra.mxu1 %v649_v43 }
  0xc7   : > { %v635_v48 = vpop.f32.mrf.mxu3  ;;  %v334_v54 = vpop.permute.xlu1 %333 }
  0xc8   : > { %679 = vmatpush.msra.mxu1 %v648_v46  ;;  %v2282_v53 = vpop.permute.xlu0 %889  ;;  %v408_v55 = vadd.f32 %v407_v32, %v334_v54  ;;  %v426_v32 = vmax.f32 %v411_v19, 0.0  ;;  %v636_v40 = vadd.f32 %v635_v48, %v2240_v11 }
  0xca   : > { %680 = vmatpush.msra.mxu1 %v647_v49  ;;  %v413_v51 = vpop.f32.mrf.mxu0  ;;  %v425_v57 = vmax.f32 %v408_v55, 0.0 }
  0xcb   : > { %1615 = vmatmul.msk.f32.vlgmr.msra.gmra.mxu1 %vm437_vm1, %v655_v50 }
  0xcc   : > { %453 = vmatpush.msrb.mxu0 %v425_v57 }
  0xce   : > { %454 = vmatpush.msrb.mxu0 %v424_v56 }
  0xcf   : > { %v638_v58 = vpop.f32.mrf.mxu3  ;;  %v319_v62 = vpop.permute.xlu1 %318 }
  0xd0   : > { %v324_v61 = vpop.permute.xlu0 %323  ;;  %v399_v0 = vadd.f32 %v398_v16, %v319_v62  ;;  %v639_v37 = vadd.f32 %v638_v58, %v2225_v3 }
  0xd1   : > { %v402_v63 = vadd.f32 %v401_v23, %v324_v61 }
  0xd2   : > { %v416_v60 = vpop.f32.mrf.mxu0  ;;  %v422_v7 = vmax.f32 %v399_v0, 0.0  ;;  %v652_v42 = vmax.f32 %v639_v37, 0.0 }
  0xd3   : > { %v423_v1 = vmax.f32 %v402_v63, 0.0 }
  0xd5   : > { %455 = vmatpush.msrb.mxu0 %v423_v1 }
  0xd7   : > { %v641_v8 = vpop.f32.mrf.mxu3  ;;  %456 = vmatpush.msrb.mxu0 %v422_v7  ;;  %v344_v18 = vpop.permute.xlu1 %343 }
  0xd8   : > { %v349_v17 = vpop.permute.xlu0 %348  ;;  %1605 = vmatmul.msk.f32.vlgmr.msrb.gmra.mxu0 %vm437_vm1, %v430_v9  ;;  %v414_v26 = vadd.f32 %v413_v51, %v344_v18  ;;  %v642_v16 = vadd.f32 %v641_v8, %v2238_v10  ;;  %v651_v10 = vmax.f32 %v636_v40, 0.0 }
  0xd9   : > { %v417_v21 = vadd.f32 %v416_v60, %v349_v17 }
  0xda   : > { %v419_v13 = vpop.f32.mrf.mxu0  ;;  %v427_v36 = vmax.f32 %v414_v26, 0.0  ;;  %v653_v41 = vmax.f32 %v642_v16, 0.0 }
  0xdb   : > { %v420_v15 = vadd.f32 %v419_v13, %v354_v59  ;;  %v428_v27 = vmax.f32 %v417_v21, 0.0 }
  0xdd   : > { %v429_v20 = vmax.f32 %v420_v15, 0.0 }
  0xdf   : > { %v644_v23 = vpop.f32.mrf.mxu3  ;;  %483 = vmatpush.msra.mxu0 %v429_v20  ;;  %v435_v52 = vpop.permute.xlu1 %434 }
  0xe0   : > { %v645_v31 = vadd.f32 %v644_v23, %v2223_v2  ;;  %v685_v2 = vld [vmem:[#allocation2 + $0x98] sm:$0xff]  ;;  %v466_v3 = vpop.permute.xlu0 %465 }
  0xe1   : > { %484 = vmatpush.msra.mxu0 %v428_v27 }
  0xe2   : > { %v654_v38 = vmax.f32 %v645_v31, 0.0 }
  0xe3   : > { %485 = vmatpush.msra.mxu0 %v427_v36 }
  0xe4   : > { %707 = vmatpush.msra.mxu2 %v654_v38 }
  0xe5   : > { %486 = vmatpush.msra.mxu0 %v426_v32 }
  0xe6   : > { %708 = vmatpush.msra.mxu2 %v653_v41  ;;  %1606 = vmatmul.msk.f32.vlgmr.msra.gmra.mxu0 %vm437_vm1, %v461_v39 }
  0xe8   : > { %709 = vmatpush.msra.mxu2 %v652_v42 }
  0xea   : > { %710 = vmatpush.msra.mxu2 %v651_v10 }
  0xeb   : > { %1616 = vmatmul.msk.f32.vlgmr.msra.gmra.mxu2 %vm437_vm1, %v685_v2 }
 0x148   : > { %v682_v61 = vpop.f32.mrf.mxu1 }
 0x149   : > { %v683_v1 = vadd.f32 %v682_v61, %v2261_v24 }
 0x155   : > { %v458_v43 = vpop.f32.mrf.mxu0 }
 0x156   : > { %v459_v54 = vadd.f32 %v458_v43, %v435_v52 }
 0x163   : > { %v488_v46 = vpop.f32.mrf.mxu0 }
 0x164   : > { %v489_v47 = vadd.f32 %v488_v46, %v466_v3 }
 0x166   : > { %v491_v49 = vmul.f32 0.5, %v489_v47 }
 0x168   : > { %1723 = vtanh.f32 %v491_v49 }
 0x16e   : > { %v1724_v11 = vpop.eup %1723  ;;  %v712_v48 = vpop.f32.mrf.mxu2 }
 0x16f   : > { %v493_v50 = vmul.f32 0.5, %v1724_v11  ;;  %v713_v51 = vadd.f32 %v712_v48, %v2227_v5 }
 0x171   : > { %v494_v55 = vadd.f32 0.5, %v493_v50  ;;  %v715_v56 = vmul.f32 0.5, %v713_v51 }
 0x173   : > { %v495_v57 = vmul.f32 %v494_v55, %v459_v54  ;;  %1725 = vtanh.f32 %v715_v56 }
 0x175   : > { %v496_v58 = vrot.slane %v495_v57, 4 }
 0x177   : > { %v497_v59 = vmax.f32 %v495_v57, %v496_v58  ;;  %v753_v58 = vld [vmem:[#allocation2 + $0xa0] sm:$0xff] }
 0x179   : > { %v1726_v60 = vpop.eup %1725  ;;  %v498_v62 = vrot.slane %v497_v59, 2 }
 0x17a   : > { %v717_v63 = vmul.f32 0.5, %v1726_v60 }
 0x17b   : > { %v499_v0 = vmax.f32 %v497_v59, %v498_v62 }
 0x17c   : > { %v718_v7 = vadd.f32 0.5, %v717_v63 }
 0x17d   : > { %v500_v8 = vrot.slane %v499_v0, 1 }
 0x17e   : > { %v719_v9 = vmul.f32 %v718_v7, %v683_v1 }
 0x17f   : > { %v501_v13 = vmax.f32 %v499_v0, %v500_v8 }
 0x180   : > { %v720_v5 = vrot.slane %v719_v9, 4 }
 0x181   : > { %v502_v14 = vsub.f32 %v495_v57, %v501_v13  ;;  %v823_v13 = vld [vmem:[#allocation2 + $0xc0] sm:$0xff] }
 0x182   : > { %v721_v15 = vmax.f32 %v719_v9, %v720_v5  ;;  %v755_v5 = vld [vmem:[#allocation2 + $0xb0] sm:$0xff] }
 0x183   : > { %v503_v17 = vmul.f32 1.442695, %v502_v14  ;;  %v824_v14 = vld [vmem:[#allocation2 + $0xc8] sm:$0xff] }
 0x184   : > { %v722_v18 = vrot.slane %v721_v15, 2 }
 0x185   : > { %1727 = vpow2.f32 %v503_v17  ;;  %v825_v17 = vld [vmem:[#allocation2 + $0xd0] sm:$0xff] }
 0x186   : > { %v723_v19 = vmax.f32 %v721_v15, %v722_v18  ;;  %v756_v15 = vld [vmem:[#allocation2 + $0xb8] sm:$0xff] }
 0x187   : > { %v826_v18 = vld [vmem:[#allocation2 + $0xd8] sm:$0xff] }
 0x188   : > { %v724_v20 = vrot.slane %v723_v19, 1 }
 0x18a   : > { %v725_v21 = vmax.f32 %v723_v19, %v724_v20  ;;  %v828_v19 = vld [vmem:[#allocation2 + $0xe8] sm:$0xff]  ;;  %v829_v20 = vld [vmem:[#allocation2 + $0xf0] sm:$0xff] }
 0x18b   : > { %v1728_v26 = vpop.eup %1727 }
 0x18c   : > { %v726_v27 = vsub.f32 %v719_v9, %v725_v21  ;;  %v505_v23 = vrot.slane %v1728_v26, 4  ;;  %v830_v21 = vld [vmem:[#allocation2 + $0xf8] sm:$0xff] }
 0x18e   : > { %v727_v16 = vmul.f32 1.442695, %v726_v27  ;;  %v506_v31 = vadd.f32 %v1728_v26, %v505_v23  ;;  %v832_v27 = vld [vmem:[#allocation2 + $0x108] sm:$0xff]  ;;  %v833_v23 = vld [vmem:[#allocation2 + $0x110] sm:$0xff] }
 0x190   : > { %1729 = vpow2.f32 %v727_v16  ;;  %v507_v24 = vrot.slane %v506_v31, 2  ;;  %v834_v16 = vld [vmem:[#allocation2 + $0x118] sm:$0xff] }
 0x192   : > { %v508_v32 = vadd.f32 %v507_v24, %v506_v31 }
 0x194   : > { %v509_v36 = vrot.slane %v508_v32, 1 }
 0x196   : > { %v1730_v37 = vpop.eup %1729  ;;  %v510_v38 = vadd.f32 %v509_v36, %v508_v32 }
 0x197   : > { %v729_v39 = vrot.slane %v1730_v37, 4 }
 0x198   : > { %1731 = vrcp.f32 %v510_v38  ;;  %v522_v47 = vand.u32 2147483648, %v510_v38  ;;  %v520_v11 = vand.u32 2147483647, %v510_v38  ;;  %vm516_vm3 = vweird.f32 %v510_v38 }
 0x199   : > { %v730_v40 = vadd.f32 %v1730_v37, %v729_v39 }
 0x19a   : > { %v523_v50 = vor.u32 1.1754944e-38, %v522_v47  ;;  %vm521_vm5 = vcmp.eq.f32.partialorder %v520_v11, 8.507059e+37 }
 0x19b   : > { %v731_v41 = vrot.slane %v730_v40, 2 }
 0x19d   : > { %v732_v42 = vadd.f32 %v731_v41, %v730_v40 }
 0x19e   : > { %v1732_v10 = vpop.eup %1731 }
 0x19f   : > { %v512_v2 = vmul.f32 %v1732_v10, %v510_v38  ;;  %v733_v43 = vrot.slane %v732_v42, 1  ;;  %vm517_vm2 = vweird.f32 %v1732_v10 }
 0x1a0   : > { %vm518_vm4 = vmor %vm516_vm3, %vm517_vm2 }
 0x1a1   : > { %v513_v3 = vsub.f32 1.0, %v512_v2  ;;  %v734_v46 = vadd.f32 %v733_v43, %v732_v42 }
 0x1a3   : > { %v514_v49 = vmul.f32 %v1732_v10, %v513_v3  ;;  %1733 = vrcp.f32 %v734_v46  ;;  %v746_v60 = vand.u32 2147483648, %v734_v46  ;;  %v744_v62 = vand.u32 2147483647, %v734_v46 }
 0x1a4   : > { %vm740_vm7 = vweird.f32 %v734_v46 }
 0x1a5   : > { %v515_v48 = vadd.f32 %v1732_v10, %v514_v49  ;;  %v747_v0 = vor.u32 1.1754944e-38, %v746_v60  ;;  %vm745_vm9 = vcmp.eq.f32.partialorder %v744_v62, 8.507059e+37 }
 0x1a7   : > { %v519_v51 = vsel %vm518_vm4, %v1732_v10, %v515_v48 }
 0x1a8   : > { %v524_v52 = vsel %vm521_vm5, %v523_v50, %v519_v51 }
 0x1a9   : > { %v1734_v54 = vpop.eup %1733  ;;  %v525_v55 = vmul.f32 %v1728_v26, %v524_v52  ;;  %v831_v26 = vld [vmem:[#allocation2 + $0x100] sm:$0xff] }
 0x1aa   : > { %v736_v56 = vmul.f32 %v1734_v54, %v734_v46  ;;  %vm741_vm6 = vweird.f32 %v1734_v54 }
 0x1ab   : > { %v752_v57 = vmul.f32 %v525_v55, %v2077_v6  ;;  %750 = vst [vmem:[%s2298_s20] sm:$0xff] %v525_v55  ;;  %vm742_vm8 = vmor %vm740_vm7, %vm741_vm6  ;;  %v754_v6 = vld [vmem:[#allocation2 + $0xa8] sm:$0xff]  ;;  %s1851_s20 = scalar_lea.hbm %s2425_s5, 16 }
 0x1ac   : > { %v737_v59 = vsub.f32 1.0, %v736_v56  ;;  %p1853_p4 = scmp.lt.s32.totalorder %s1851_s20, %s1847_s0 }
 0x1ad   : > { %808 = vmatpush.msrb.mxu3 %v752_v57 }
 0x1ae   : > { %1617 = vmatmul.msk.f32.vlgmr.msrb.gmra.mxu3 %vm356_vm0, %v753_v58  ;;  %v738_v61 = vmul.f32 %v1734_v54, %v737_v59  ;;  %p1854_p7 = por %p1853_p4, %p1852_p3 }
 0x1b0   : > { %v739_v63 = vadd.f32 %v1734_v54, %v738_v61  ;;  %p1855_p8 = pnand %p1854_p7, %p1850_p2 }
 0x1b2   : > { %v743_v1 = vsel %vm742_vm8, %v1734_v54, %v739_v63 }
 0x1b3   : > { %v748_v7 = vsel %vm745_vm9, %v747_v0, %v743_v1 }
 0x1b4   : > { %v749_v8 = vmul.f32 %v1730_v37, %v748_v7 }
 0x1b6   : > { %1618 = vmatmul.msk.f32.gmra.mxu3 %vm356_vm0, %v754_v6  ;;  %751 = vst [vmem:[%s2303_s28] sm:$0xff] %v749_v8  ;;  %v822_v9 = vmul.f32 %v749_v8, %v2075_v4  ;;  %v827_v4 = vld [vmem:[#allocation2 + $0xe0] sm:$0xff] }
 0x1b8   : > { %958 = vmatpush.msrb.mxu2 %v822_v9 }
 0x1b9   : > { %1621 = vmatmul.msk.f32.vlgmr.msrb.gmra.mxu2 %vm356_vm0, %v823_v13 }
 0x1be   : > { %1619 = vmatmul.msk.f32.gmra.mxu3 %vm356_vm0, %v755_v5 }
 0x1c1   : > { %1622 = vmatmul.msk.f32.gmra.mxu2 %vm356_vm0, %v824_v14 }
 0x1c6   : > { %1620 = vmatmul.msk.f32.gmra.mxu3 %vm356_vm0, %v756_v15 }
 0x1c9   : > { %1623 = vmatmul.msk.f32.gmra.mxu2 %vm356_vm0, %v825_v17 }
 0x1d1   : > { %1624 = vmatmul.msk.f32.gmra.mxu2 %vm356_vm0, %v826_v18 }
 0x1d9   : > { %1625 = vmatmul.msk.f32.gmra.mxu2 %vm356_vm0, %v827_v4 }
 0x1e1   : > { %1626 = vmatmul.msk.f32.gmra.mxu2 %vm356_vm0, %v828_v19 }
 0x1e9   : > { %1627 = vmatmul.msk.f32.gmra.mxu2 %vm356_vm0, %v829_v20 }
 0x1f1   : > { %1628 = vmatmul.msk.f32.gmra.mxu2 %vm356_vm0, %v830_v21 }
 0x1f9   : > { %1629 = vmatmul.msk.f32.gmra.mxu2 %vm356_vm0, %v831_v26 }
 0x201   : > { %1630 = vmatmul.msk.f32.gmra.mxu2 %vm356_vm0, %v832_v27 }
 0x209   : > { %1631 = vmatmul.msk.f32.gmra.mxu2 %vm356_vm0, %v833_v23 }
 0x211   : > { %1632 = vmatmul.msk.f32.gmra.mxu2 %vm356_vm0, %v834_v16 }
 0x23c   : > { %v960_v31 = vpop.f32.mrf.mxu2 }
 0x23d   : > { %v961_v46 = vadd.f32 %v960_v31, %v2269_v30 }
 0x23f   : > { %v996_v11 = vmul.f32 0.5, %v961_v46  ;;  %v1050_v46 = vld [vmem:[#allocation2 + $0x150] sm:$0xff] }
 0x244   : > { %v963_v24 = vpop.f32.mrf.mxu2 }
 0x245   : > { %v964_v43 = vadd.f32 %v963_v24, %v2267_v29 }
 0x247   : > { %v997_v49 = vmul.f32 0.5, %v964_v43  ;;  %v1048_v43 = vld [vmem:[#allocation2 + $0x140] sm:$0xff] }
 0x24c   : > { %v966_v32 = vpop.f32.mrf.mxu2 }
 0x24d   : > { %v967_v10 = vadd.f32 %v966_v32, %v2242_v12 }
 0x24f   : > { %v998_v47 = vmul.f32 0.5, %v967_v10  ;;  %v1046_v10 = vld [vmem:[#allocation2 + $0x130] sm:$0xff] }
 0x254   : > { %v969_v36 = vpop.f32.mrf.mxu2 }
 0x255   : > { %v970_v42 = vadd.f32 %v969_v36, %v2263_v25 }
 0x257   : > { %v999_v3 = vmul.f32 0.5, %v970_v42  ;;  %v1045_v42 = vld [vmem:[#allocation2 + $0x128] sm:$0xff] }
 0x259   : > { %1735 = vtanh.f32 %v999_v3  ;;  %v1049_v3 = vld [vmem:[#allocation2 + $0x148] sm:$0xff] }
 0x25a   : > { %1737 = vtanh.f32 %v998_v47  ;;  %v1051_v47 = vld [vmem:[#allocation2 + $0x158] sm:$0xff] }
 0x25b   : > { %1739 = vtanh.f32 %v997_v49  ;;  %v1052_v49 = vld [vmem:[#allocation2 + $0x160] sm:$0xff] }
 0x25c   : > { %v972_v37 = vpop.f32.mrf.mxu2  ;;  %1741 = vtanh.f32 %v996_v11  ;;  %v1053_v11 = vld [vmem:[#allocation2 + $0x168] sm:$0xff] }
 0x25d   : > { %v973_v56 = vadd.f32 %v972_v37, %v2279_v45 }
 0x25f   : > { %v1736_v29 = vpop.eup %1735 }
 0x260   : > { %v1738_v55 = vpop.eup %1737 }
 0x261   : > { %v1006_v60 = vmul.f32 0.5, %v1738_v55  ;;  %v1081_v55 = vpop.permute.xlu0 %1080 }
 0x263   : > { %v1010_v0 = vadd.f32 0.5, %v1006_v60 }
 0x264   : > { %v975_v38 = vpop.f32.mrf.mxu2 }
 0x265   : > { %v976_v52 = vadd.f32 %v975_v38, %v2265_v28 }
 0x26c   : > { %v978_v39 = vpop.f32.mrf.mxu2 }
 0x26d   : > { %v979_v25 = vadd.f32 %v978_v39, %v2271_v33 }
 0x274   : > { %v981_v40 = vpop.f32.mrf.mxu2 }
 0x275   : > { %v982_v48 = vadd.f32 %v981_v40, %v2259_v22  ;;  %v1007_v22 = vmul.f32 0.5, %v1736_v29 }
 0x277   : > { %1743 = vtanh.f32 %v982_v48  ;;  %v1054_v48 = vld [vmem:[#allocation2 + $0x170] sm:$0xff] }
 0x278   : > { %1745 = vtanh.f32 %v979_v25 }
 0x279   : > { %1747 = vtanh.f32 %v976_v52 }
 0x27c   : > { %v984_v41 = vpop.f32.mrf.mxu2 }
 0x27d   : > { %v985_v30 = vadd.f32 %v984_v41, %v2282_v53  ;;  %v1011_v53 = vadd.f32 0.5, %v1007_v22  ;;  %v1044_v41 = vld [vmem:[#allocation2 + $0x120] sm:$0xff]  ;;  %v1086_v22 = vpop.permute.xlu2 %1085 }
 0x27f   : > { %v1016_v58 = vmul.f32 0.5, %v985_v30 }
 0x284   : > { %v987_v2 = vpop.f32.mrf.mxu2 }
 0x285   : > { %v988_v12 = vadd.f32 %v987_v2, %v2275_v35  ;;  %v1047_v2 = vld [vmem:[#allocation2 + $0x138] sm:$0xff] }
 0x287   : > { %v1017_v57 = vmul.f32 0.5, %v988_v12 }
 0x28c   : > { %v990_v50 = vpop.f32.mrf.mxu2 }
 0x28d   : > { %v991_v51 = vadd.f32 %v990_v50, %v2277_v44  ;;  %v1740_v44 = vpop.eup %1739  ;;  %v1055_v50 = vld [vmem:[#allocation2 + $0x178] sm:$0xff] }
 0x28e   : > { %v1742_v59 = vpop.eup %1741  ;;  %v1005_v61 = vmul.f32 0.5, %v1740_v44  ;;  %v1106_v44 = vpop.permute.xlu0 %1105 }
 0x28f   : > { %v1018_v54 = vmul.f32 0.5, %v991_v51  ;;  %v1744_v28 = vpop.eup %1743  ;;  %v1004_v45 = vmul.f32 0.5, %v1742_v59  ;;  %v1071_v59 = vpop.permute.xlu2 %1070 }
 0x290   : > { %v1746_v63 = vpop.eup %1745  ;;  %v1035_v1 = vmul.f32 %v1744_v28, %v1011_v53  ;;  %v1009_v8 = vadd.f32 0.5, %v1005_v61 }
 0x291   : > { %1749 = vtanh.f32 %v1018_v54  ;;  %v1748_v6 = vpop.eup %1747  ;;  %v1034_v9 = vmul.f32 %v1746_v63, %v1010_v0  ;;  %v1008_v14 = vadd.f32 0.5, %v1004_v45 }
 0x292   : > { %1751 = vtanh.f32 %v973_v56  ;;  %v1076_v56 = vpop.permute.xlu1 %1075 }
 0x293   : > { %1753 = vtanh.f32 %v1017_v57 }
 0x294   : > { %v993_v33 = vpop.f32.mrf.mxu2  ;;  %1755 = vtanh.f32 %v1016_v58 }
 0x295   : > { %v994_v35 = vadd.f32 %v993_v33, %v2273_v34  ;;  %v1033_v34 = vmul.f32 %v1748_v6, %v1009_v8 }
 0x297   : > { %v1019_v62 = vmul.f32 0.5, %v994_v35  ;;  %v1750_v7 = vpop.eup %1749  ;;  %v1096_v35 = vpop.permute.xlu0 %1095 }
 0x298   : > { %v1752_v13 = vpop.eup %1751  ;;  %v1026_v17 = vmul.f32 0.5, %v1750_v7  ;;  %v1126_v45 = vpop.permute.xlu2 %1125 }
 0x299   : > { %1757 = vtanh.f32 %v1019_v62  ;;  %v1754_v5 = vpop.eup %1753  ;;  %v1032_v4 = vmul.f32 %v1752_v13, %v1008_v14 }
 0x29a   : > { %1759 = vtanh.f32 %v1035_v1  ;;  %v1756_v15 = vpop.eup %1755  ;;  %v1025_v19 = vmul.f32 0.5, %v1754_v5  ;;  %v1030_v27 = vadd.f32 0.5, %v1026_v17  ;;  %v1101_v58 = vpop.permute.xlu1 %1100 }
 0x29b   : > { %1761 = vtanh.f32 %v1034_v9  ;;  %v1024_v21 = vmul.f32 0.5, %v1756_v15 }
 0x29c   : > { %1763 = vtanh.f32 %v1033_v34  ;;  %v1029_v31 = vadd.f32 0.5, %v1025_v19 }
 0x29d   : > { %1765 = vtanh.f32 %v1032_v4  ;;  %v1028_v36 = vadd.f32 0.5, %v1024_v21 }
 0x29f   : > { %v1758_v18 = vpop.eup %1757  ;;  %v1116_v5 = vpop.permute.xlu0 %1115 }
 0x2a0   : > { %v1027_v20 = vmul.f32 0.5, %v1758_v18  ;;  %v1760_v23 = vpop.eup %1759  ;;  %v1091_v19 = vpop.permute.xlu2 %1090 }
 0x2a1   : > { %v1762_v24 = vpop.eup %1761 }
 0x2a2   : > { %v1031_v26 = vadd.f32 0.5, %v1027_v20  ;;  %v1042_v32 = vmul.f32 %v1762_v24, %v1030_v27  ;;  %v1764_v37 = vpop.eup %1763  ;;  %v1121_v53 = vpop.permute.xlu1 %1120 }
 0x2a3   : > { %v1041_v38 = vmul.f32 %v1764_v37, %v1029_v31  ;;  %v1766_v39 = vpop.eup %1765 }
 0x2a4   : > { %v1043_v16 = vmul.f32 %v1760_v23, %v1031_v26  ;;  %v1040_v40 = vmul.f32 %v1766_v39, %v1028_v36 }
 0x2a6   : > { %1176 = vmatpush.msrb.mxu1 %v1043_v16 }
 0x2a8   : > { %1177 = vmatpush.msrb.mxu1 %v1042_v32 }
 0x2aa   : > { %1178 = vmatpush.msrb.mxu1 %v1041_v38  ;;  %v1111_v34 = vpop.permute.xlu1 %1110 }
 0x2ac   : > { %1179 = vmatpush.msrb.mxu1 %v1040_v40 }
 0x2ad   : > { %1633 = vmatmul.msk.f32.vlgmr.msrb.gmra.mxu1 %vm437_vm1, %v1044_v41 }
 0x2b5   : > { %1634 = vmatmul.msk.f32.gmra.mxu1 %vm437_vm1, %v1045_v42 }
 0x2bd   : > { %1635 = vmatmul.msk.f32.gmra.mxu1 %vm437_vm1, %v1046_v10 }
 0x2c5   : > { %1636 = vmatmul.msk.f32.gmra.mxu1 %vm437_vm1, %v1047_v2 }
 0x2cd   : > { %1637 = vmatmul.msk.f32.gmra.mxu1 %vm437_vm1, %v1048_v43 }
 0x2d5   : > { %1638 = vmatmul.msk.f32.gmra.mxu1 %vm437_vm1, %v1049_v3 }
 0x2dd   : > { %1639 = vmatmul.msk.f32.gmra.mxu1 %vm437_vm1, %v1050_v46 }
 0x2e5   : > { %1640 = vmatmul.msk.f32.gmra.mxu1 %vm437_vm1, %v1051_v47 }
 0x2ed   : > { %1641 = vmatmul.msk.f32.gmra.mxu1 %vm437_vm1, %v1052_v49 }
 0x2f5   : > { %1642 = vmatmul.msk.f32.gmra.mxu1 %vm437_vm1, %v1053_v11 }
 0x2fd   : > { %1643 = vmatmul.msk.f32.gmra.mxu1 %vm437_vm1, %v1054_v48 }
 0x305   : > { %1644 = vmatmul.msk.f32.gmra.mxu1 %vm437_vm1, %v1055_v50 }
 0x32a   : > { %v1181_v51 = vpop.f32.mrf.mxu1 }
 0x32b   : > { %v1182_v0 = vadd.f32 %v1181_v51, %v1071_v59 }
 0x32d   : > { %v1217_v7 = vmul.f32 0.5, %v1182_v0  ;;  %v1268_v0 = vld [vmem:[#allocation2 + $0x198] sm:$0xff] }
 0x332   : > { %v1184_v25 = vpop.f32.mrf.mxu1 }
 0x333   : > { %v1185_v62 = vadd.f32 %v1184_v25, %v1076_v56 }
 0x335   : > { %v1218_v6 = vmul.f32 0.5, %v1185_v62  ;;  %v1265_v62 = vld [vmem:[#allocation2 + $0x180] sm:$0xff] }
 0x33a   : > { %v1187_v12 = vpop.f32.mrf.mxu1 }
 0x33b   : > { %v1188_v28 = vadd.f32 %v1187_v12, %v1081_v55 }
 0x33d   : > { %v1219_v1 = vmul.f32 0.5, %v1188_v28 }
 0x342   : > { %v1190_v29 = vpop.f32.mrf.mxu1 }
 0x343   : > { %v1191_v60 = vadd.f32 %v1190_v29, %v1086_v22 }
 0x345   : > { %v1220_v63 = vmul.f32 0.5, %v1191_v60 }
 0x347   : > { %1767 = vtanh.f32 %v1220_v63  ;;  %v1266_v63 = vld [vmem:[#allocation2 + $0x188] sm:$0xff] }
 0x348   : > { %1769 = vtanh.f32 %v1219_v1  ;;  %v810_v1 = vpop.f32.mrf.mxu3 }
 0x349   : > { %1771 = vtanh.f32 %v1218_v6 }
 0x34a   : > { %v1193_v52 = vpop.f32.mrf.mxu1  ;;  %1773 = vtanh.f32 %v1217_v7 }
 0x34b   : > { %v1194_v26 = vadd.f32 %v1193_v52, %v1091_v19 }
 0x34d   : > { %v1768_v17 = vpop.eup %1767 }
 0x34e   : > { %v1770_v21 = vpop.eup %1769  ;;  %v1228_v27 = vmul.f32 0.5, %v1768_v17 }
 0x34f   : > { %v1772_v16 = vpop.eup %1771  ;;  %v1227_v36 = vmul.f32 0.5, %v1770_v21 }
 0x350   : > { %v1774_v32 = vpop.eup %1773  ;;  %v1226_v39 = vmul.f32 0.5, %v1772_v16  ;;  %v1232_v40 = vadd.f32 0.5, %v1228_v27  ;;  %v1335_v27 = vld [vmem:[#allocation2 + $0x1a8] sm:$0x1] }
 0x351   : > { %v1225_v10 = vmul.f32 0.5, %v1774_v32  ;;  %v1231_v2 = vadd.f32 0.5, %v1227_v36 }
 0x352   : > { %v1196_v30 = vpop.f32.mrf.mxu1  ;;  %v1230_v47 = vadd.f32 0.5, %v1226_v39 }
 0x353   : > { %v1197_v18 = vadd.f32 %v1196_v30, %v1096_v35  ;;  %v1229_v50 = vadd.f32 0.5, %v1225_v10 }
 0x35a   : > { %v1199_v54 = vpop.f32.mrf.mxu1 }
 0x35b   : > { %v1200_v14 = vadd.f32 %v1199_v54, %v1101_v58 }
 0x362   : > { %v1202_v57 = vpop.f32.mrf.mxu1 }
 0x363   : > { %v1203_v8 = vadd.f32 %v1202_v57, %v1106_v44 }
 0x365   : > { %1775 = vtanh.f32 %v1203_v8  ;;  %v813_v8 = vpop.f32.mrf.mxu3 }
 0x366   : > { %1777 = vtanh.f32 %v1200_v14 }
 0x367   : > { %1779 = vtanh.f32 %v1197_v18 }
 0x36a   : > { %v1205_v33 = vpop.f32.mrf.mxu1 }
 0x36b   : > { %v1206_v4 = vadd.f32 %v1205_v33, %v1111_v34  ;;  %v1776_v38 = vpop.eup %1775  ;;  %v1281_v34 = vpop.permute.xlu1 %1280 }
 0x36c   : > { %v1778_v42 = vpop.eup %1777  ;;  %v1256_v43 = vmul.f32 %v1776_v38, %v1232_v40  ;;  %v1334_v38 = vld [vmem:[#allocation2 + $0x1a0] sm:$0x1] }
 0x36d   : > { %v1237_v31 = vmul.f32 0.5, %v1206_v4  ;;  %v1780_v3 = vpop.eup %1779  ;;  %v1255_v49 = vmul.f32 %v1778_v42, %v1231_v2  ;;  %v816_v14 = vpop.f32.mrf.mxu3 }
 0x36e   : > { %v1254_v51 = vmul.f32 %v1780_v3, %v1230_v47 }
 0x372   : > { %v1208_v61 = vpop.f32.mrf.mxu1 }
 0x373   : > { %v1209_v15 = vadd.f32 %v1208_v61, %v1116_v5  ;;  %v1286_v5 = vpop.permute.xlu0 %1285  ;;  %v774_v16 = vpop.permute.xlu1 %773 }
 0x375   : > { %v1238_v23 = vmul.f32 0.5, %v1209_v15  ;;  %v819_v21 = vpop.f32.mrf.mxu3 }
 0x37a   : > { %v1211_v9 = vpop.f32.mrf.mxu1 }
 0x37b   : > { %v1212_v13 = vadd.f32 %v1211_v9, %v1121_v53  ;;  %v1291_v9 = vpop.permute.xlu2 %1290  ;;  %v779_v19 = vpop.permute.xlu0 %778 }
 0x37d   : > { %v1239_v20 = vmul.f32 0.5, %v1212_v13 }
 0x37f   : > { %1781 = vtanh.f32 %v1239_v20 }
 0x380   : > { %1783 = vtanh.f32 %v1194_v26 }
 0x381   : > { %1785 = vtanh.f32 %v1238_v23  ;;  %v820_v23 = vadd.f32 %v819_v21, %v779_v19 }
 0x382   : > { %v1214_v24 = vpop.f32.mrf.mxu1  ;;  %1787 = vtanh.f32 %v1237_v31  ;;  %v817_v31 = vadd.f32 %v816_v14, %v774_v16 }
 0x383   : > { %v1215_v37 = vadd.f32 %v1214_v24, %v1126_v45  ;;  %v1267_v45 = vld [vmem:[#allocation2 + $0x190] sm:$0xff]  ;;  %v1276_v18 = vpop.permute.xlu2 %1275  ;;  %v764_v36 = vpop.permute.xlu0 %763 }
 0x385   : > { %v1240_v41 = vmul.f32 0.5, %v1215_v37  ;;  %v1782_v46 = vpop.eup %1781  ;;  %v811_v37 = vadd.f32 %v810_v1, %v764_v36 }
 0x386   : > { %v1784_v11 = vpop.eup %1783  ;;  %v1247_v12 = vmul.f32 0.5, %v1782_v46 }
 0x387   : > { %1789 = vtanh.f32 %v1240_v41  ;;  %v1786_v48 = vpop.eup %1785  ;;  %v1253_v52 = vmul.f32 %v1784_v11, %v1229_v50 }
 0x388   : > { %1791 = vtanh.f32 %v1256_v43  ;;  %v1788_v25 = vpop.eup %1787  ;;  %v1246_v30 = vmul.f32 0.5, %v1786_v48  ;;  %v1251_v56 = vadd.f32 0.5, %v1247_v12 }
 0x389   : > { %1793 = vtanh.f32 %v1255_v49  ;;  %v1245_v55 = vmul.f32 0.5, %v1788_v25 }
 0x38a   : > { %1795 = vtanh.f32 %v1254_v51  ;;  %v1250_v44 = vadd.f32 0.5, %v1246_v30 }
 0x38b   : > { %1797 = vtanh.f32 %v1253_v52  ;;  %v1249_v59 = vadd.f32 0.5, %v1245_v55  ;;  %v769_v24 = vpop.permute.xlu2 %768 }
 0x38c   : > { %v814_v32 = vadd.f32 %v813_v8, %v769_v24 }
 0x38d   : > { %v1790_v29 = vpop.eup %1789 }
 0x38e   : > { %v1248_v54 = vmul.f32 0.5, %v1790_v29  ;;  %v1792_v57 = vpop.eup %1791 }
 0x38f   : > { %v1794_v33 = vpop.eup %1793 }
 0x390   : > { %v1252_v22 = vadd.f32 0.5, %v1248_v54  ;;  %v1263_v60 = vmul.f32 %v1794_v33, %v1251_v56  ;;  %v1796_v35 = vpop.eup %1795 }
 0x391   : > { %v1262_v28 = vmul.f32 %v1796_v35, %v1250_v44  ;;  %v1798_v61 = vpop.eup %1797 }
 0x392   : > { %v1264_v58 = vmul.f32 %v1792_v57, %v1252_v22  ;;  %v1261_v53 = vmul.f32 %v1798_v61, %v1249_v59 }
 0x394   : > { %1317 = vmatpush.msrb.mxu0 %v1264_v58 }
 0x396   : > { %1318 = vmatpush.msrb.mxu0 %v1263_v60 }
 0x398   : > { %1319 = vmatpush.msrb.mxu0 %v1262_v28 }
 0x39a   : > { %1320 = vmatpush.msrb.mxu0 %v1261_v53 }
 0x39b   : > { %1645 = vmatmul.msk.f32.vlgmr.msrb.gmra.mxu0 %vm437_vm1, %v1265_v62 }
 0x3a3   : > { %1646 = vmatmul.msk.f32.gmra.mxu0 %vm437_vm1, %v1266_v63 }
 0x3ab   : > { %1647 = vmatmul.msk.f32.gmra.mxu0 %vm437_vm1, %v1267_v45 }
 0x3b3   : > { %1648 = vmatmul.msk.f32.gmra.mxu0 %vm437_vm1, %v1268_v0 }
 0x418   : > { %v1322_v6 = vpop.f32.mrf.mxu0 }
 0x419   : > { %v1323_v26 = vadd.f32 %v1322_v6, %v1276_v18 }
 0x420   : > { %v1325_v7 = vpop.f32.mrf.mxu0 }
 0x421   : > { %v1326_v20 = vadd.f32 %v1325_v7, %v1281_v34 }
 0x428   : > { %v1328_v13 = vpop.f32.mrf.mxu0 }
 0x429   : > { %v1329_v4 = vadd.f32 %v1328_v13, %v1286_v5 }
 0x430   : > { %v1331_v15 = vpop.f32.mrf.mxu0 }
 0x431   : > { %v1332_v17 = vadd.f32 %v1331_v15, %v1291_v9 }
 0x433   : > { %1351 = vmatpush.msra.mxu3 %v1332_v17 }
 0x435   : > { %1352 = vmatpush.msra.mxu3 %v1329_v4 }
 0x437   : > { %1353 = vmatpush.msra.mxu3 %v1326_v20 }
 0x439   : > { %1354 = vmatpush.msra.mxu3 %v1323_v26 }
 0x43a   : > { %1649 = vmatmul.msk.f32.vlgmr.msra.gmra.mxu3 %vm437_vm1, %v1335_v27 }
 0x43b   : > { %1374 = vmatpush.msrb.mxu3 %v820_v23 }
 0x43d   : > { %1375 = vmatpush.msrb.mxu3 %v817_v31 }
 0x43f   : > { %1376 = vmatpush.msrb.mxu3 %v814_v32 }
 0x441   : > { %1377 = vmatpush.msrb.mxu3 %v811_v37 }
 0x442   : > { %1650 = vmatmul.msk.f32.vlgmr.msrb.gmra.mxu3 %vm437_vm1, %v1334_v38 }
 0x443   : > { %1858 = shalt.err (!%p1855_p8)
}
 0x444   : > { %1662 = dma.vmem_to_hbm [thread:$0]  (%p2038_p5), %s1430_s13, 128, %s1432_s14, %s2360_s19  }
 0x445   : > { %s1445_s29 = sshll.u32 %s1441_s17, 4  ;;  %s1443_s9 = sshll.u32 %s2303_s28, 4  ;;  %s1446_s29 = int_to_ptr.hbm [resolvable:$true] %s1445_s29  ;;  %s1444_s9 = int_to_ptr.vmem [resolvable:$true] %s1443_s9 }
 0x446   : > { %s1873_s1 = sshra.s32 %s1446_s29, 4  ;;  %s1879_s16 = scalar_lea.hbm %s2426_s6, 16  ;;  %s1874_s1 = int_to_ptr.hbm [resolvable:$true] %s1873_s1 }
 0x447   : > { %s1875_s15 = scalar_lea.hbm %s1874_s1, 8  ;;  %p1880_p12 = scmp.lt.s32.totalorder %s1874_s1, %s2426_s6 }
 0x448   : > { %p1876_p9 = scmp.ne.s32.totalorder %s1874_s1, %s1875_s15  ;;  %p1881_p13 = scmp.lt.s32.totalorder %s1879_s16, %s1875_s15 }
 0x44a   : > { %p1877_p10 = pnand %p1876_p9, %p2038_p5  ;;  %p1882_p0 = por %p1881_p13, %p1880_p12 }
 0x44c   : > { %p1878_p11 = pneg %p1877_p10 }
 0x44e   : > { %p1883_p1 = pnand %p1882_p0, %p1878_p11 }
 0x450   : > { %1886 = shalt.err (!%p1883_p1)
}
 0x451   : > { %1663 = dma.vmem_to_hbm [thread:$0]  (%p2038_p5), %s1444_s9, 128, %s1446_s29, %s2360_s19   ;;  %v1386_v42 = vpop.permute.xlu1 %1385 }
 0x452   : > { %s1413_s14 = scalar_lea.hbm %s2424_s4, %s2019_s25  ;;  %s275_s17 = scalar_lea.vmem [#allocation5], %s2294_s18 }
 0x453   : > { %s1415_s11 = sshll.u32 %s275_s17, 4  ;;  %s1417_s12 = sshll.u32 %s1413_s14, 4  ;;  %s1416_s11 = int_to_ptr.vmem [resolvable:$true] %s1415_s11  ;;  %s1418_s12 = int_to_ptr.hbm [resolvable:$true] %s1417_s12 }
 0x454   : > { %s1395_s19 = scalar_lea.sflag [#allocation4], %s2294_s18  ;;  %s1901_s29 = sshra.s32 %s1418_s12, 4  ;;  %s1902_s29 = int_to_ptr.hbm [resolvable:$true] %s1901_s29 }
 0x455   : > { %s1903_s9 = scalar_lea.hbm %s1902_s29, 1  ;;  %s1907_s25 = scalar_lea.hbm %s2424_s4, 2 }
 0x456   : > { %p1904_p2 = scmp.ne.s32.totalorder %s1902_s29, %s1903_s9  ;;  %p1908_p7 = scmp.lt.s32.totalorder %s1902_s29, %s2424_s4 }
 0x457   : > { %p1909_p8 = scmp.lt.s32.totalorder %s1907_s25, %s1903_s9 }
 0x458   : > { %p1905_p3 = pnand %p1904_p2, %p2038_p5 }
 0x459   : > { %p1910_p9 = por %p1909_p8, %p1908_p7 }
 0x45a   : > { %p1906_p4 = pneg %p1905_p3 }
 0x45c   : > { %p1911_p10 = pnand %p1910_p9, %p1906_p4 }
 0x4bd   : > { %v1356_v39 = vpop.f32.mrf.mxu3 }
 0x4c5   : > { %v1379_v40 = vpop.f32.mrf.mxu3 }
 0x4c6   : > { %v1380_v41 = vadd.f32 %v1379_v40, %v1356_v39 }
 0x4c8   : > { %v1388_v10 = vadd.f32 %v1386_v42, %v1380_v41 }
 0x4ca   : > { %v1389_v2 = vmul.f32 0.5, %v1388_v10 }
 0x4cc   : > { %1799 = vtanh.f32 %v1389_v2 }
 0x4d2   : > { %v1800_v43 = vpop.eup %1799 }
 0x4d3   : > { %v1391_v3 = vmul.f32 0.5, %v1800_v43 }
 0x4d5   : > { %v1392_v46 = vadd.f32 0.5, %v1391_v3 }
 0x4d7   : > { %1393 = vst [vmem:[%s275_s17] sm:$0x1] %v1392_v46 }
 0x4d8   : > { %1914 = shalt.err (!%p1911_p10)
}
 0x4d9   : > { %1661 = dma.vmem_to_hbm [thread:$0]  (%p2038_p5), %s1416_s11, 16, %s1418_s12, %s1395_s19  }
 0x4da PF: > { %p1683_p11 = scmp.ge.s32.totalorder %s1957_s24, 2  ;;  %s1457_s18 = sand.u32 1, %s1945_s21  }
 0x4db   : > { %s1458_s16 = scalar_lea.sflag [#allocation4], %s1457_s18 }
 0x4dc   : > { %p1672_p12 = pnand %p1683_p11, %p2042_p6 }
 0x4de   : > { %p1673_p13 = pneg %p1672_p12 }
 0x4e0   : > { %1936 = dma.done.wait (%p1673_p13), %s1458_s16, 16  }
 0x4e1   : > { %1938 = vsyncadd (%p1673_p13), %s1458_s16, 4294967280  ;;  %s2434_s10 = sadd.s32 4294967294, %s1957_s24  }
 0x4e2   : > { %s1466_s20 = sand.u32 1, %s2434_s10  }
 0x4e3   : > { %s1467_s28 = scalar_lea.sflag [#allocation7], %s1466_s20 }
 0x4e4   : > { %1940 = dma.done.wait (%p1673_p13), %s1467_s28, 256  }
 0x4e5   : > { %1942 = vsyncadd (%p1673_p13), %s1467_s28, 4294967040  ;;  %p21_p5 = scmp.ge.s32.totalorder %s2023_s27, 4   ;;  %s2435_s21 = smov %s1949_s22 }
 0x4e6   : > { %s2436_s22 = smov %s1953_s23  ;;  %s2437_s23 = smov %s2036_s30 }
 0x4e7   : > { %s2438_s24 = smov %s2023_s27  ;;  %23 = sbr.rel (!%p21_p5) target bundleno = 9 (0x9), region = 111 }
 0x4ec   :  { %1483 = vsyncpa [#allocation3], 1 }
 0x4ed   :  { %1485 = vsyncpa [#allocation3 + $0x1], 1 }
 0x4ee   :  { %1486 = vsyncpa [#allocation4], 1 }
 0x4ef   :  { %1488 = vsyncpa [#allocation4 + $0x1], 1 }
 0x4f0   :  { %1489 = vsyncpa [#allocation7], 1 }
 0x4f1   :  { %1491 = vsyncpa [#allocation7 + $0x1], 1 }

</bundles_post_ra>
